<compile_context>
chip_gen: v7x
topology: tpu7x:2x2x1
jax: 0.10.0
libtpu: 0.0.40
codegen_flags: <defaults>
</compile_context>

<pallas_src>
import functools

import jax
import jax.numpy as jnp
from jax.experimental import pallas as pl
from jax.experimental.pallas import tpu as pltpu


def memn2n_kernel(stories_ref, queries_ref, acb_ref, h_ref, w_ref, out_ref, *,
                  hops: int):
    n, mem, emb = stories_ref.shape
    nm = n * mem
    emb2 = h_ref.shape[0]
    f32 = jnp.float32
    bf16 = jnp.bfloat16

    # Fuse the query projection into the stories projection: one LHS of
    # [stories_flat ; queries broadcast to 8 rows] against the packed [A | C | B]
    # RHS -> a single MXU push/drain.  (8 query rows keep the concat boundary
    # sublane-aligned for f32; only one row is consumed.)
    stories_flat = stories_ref[...].reshape(nm, emb)                     # (N*M, E) f32
    q_rows = jnp.broadcast_to(queries_ref[...], (8, emb))                # (8, E)   f32
    lhs = jnp.concatenate([stories_flat, q_rows], axis=0).astype(bf16)   # (N*M+8, E)
    mcu = jnp.dot(lhs, acb_ref[...], preferred_element_type=f32)         # (N*M+8, 6E)

    m3 = mcu[:nm, :emb2].reshape(n, mem, emb2)                           # (N, M, 2E)
    c3 = mcu[:nm, emb2:2 * emb2].reshape(n, mem, emb2)                   # (N, M, 2E)
    u0 = mcu[nm:nm + 1, 2 * emb2:]                                       # (1, 2E) = q @ B
    # PyTorch broadcasts u over N inside the hop loop; broadcasting up-front is
    # equivalent (the H matmul applies row-wise).
    u = jnp.broadcast_to(u0, (n, emb2))                                  # (N, 2E) f32

    H = h_ref[...]                                                       # (2E, 2E) bf16
    for _ in range(hops):
        # Memory slots stay on sublanes: (N, M, 1) columns, so the softmax and
        # the weighted sum need no lane<->sublane relayout on the hop chain.
        dotted = jnp.sum(m3 * u[:, None, :], axis=2, keepdims=True)      # (N, M, 1)
        dotted = dotted - jnp.max(dotted, axis=1, keepdims=True)
        e = jnp.exp(dotted)
        probs = e / jnp.sum(e, axis=1, keepdims=True)                    # exact softmax
        o_k = jnp.sum(c3 * probs, axis=1)                                # (N, 2E)
        # u_{k+1} = u_k @ H + o_k   (module default nonlin=None)
        u = jnp.dot(u.astype(bf16), H, preferred_element_type=f32) + o_k

    # Final projection against lane-padded W; store only the real key columns.
    res = jnp.dot(u.astype(bf16), w_ref[...], preferred_element_type=f32)
    out_ref[...] = res[:, :out_ref.shape[1]].astype(out_ref.dtype)


def pack_params(A, B, C, H, W):
    """One-time packing of weights into kernel-friendly bf16 layouts.

    Call once at init and reuse; none of this runs on the per-call forward path.
    """
    bf16 = jnp.bfloat16
    key_size = W.shape[1]
    key_pad = ((key_size + 127) // 128) * 128                            # 300 -> 384
    ACB = jnp.concatenate([A, C, B], axis=1).astype(bf16)                # (E, 6E)
    Hp = H.astype(bf16)                                                  # (2E, 2E)
    Wp = jnp.pad(W, ((0, 0), (0, key_pad - key_size))).astype(bf16)      # (2E, 384)
    return ACB, Hp, Wp


def memn2n_forward(stories, queries, ACB, Hp, Wp, *, hops=3, key_size=300):
    n, mem, emb = stories.shape
    emb2 = Hp.shape[0]
    key_pad = Wp.shape[1]
    nm = n * mem

    flops = 2 * ((nm + 8) * emb * 3 * emb2       # fused [A|C|B] projection
                 + hops * n * emb2 * emb2        # per-hop u @ H
                 + n * emb2 * key_pad)           # final u @ W
    bytes_accessed = (stories.size * 4 + queries.size * 4
                      + ACB.size * 2 + Hp.size * 2 + Wp.size * 2
                      + n * key_size * 4)

    vmem_spec = pl.BlockSpec(memory_space=pltpu.MemorySpace.VMEM)
    return pl.pallas_call(
        functools.partial(memn2n_kernel, hops=hops),
        out_shape=jax.ShapeDtypeStruct((n, key_size), jnp.float32),
        in_specs=[vmem_spec] * 5,
        out_specs=vmem_spec,
        cost_estimate=pl.CostEstimate(flops=flops,
                                      transcendentals=hops * nm,
                                      bytes_accessed=bytes_accessed),
    )(stories.astype(jnp.float32), queries.astype(jnp.float32), ACB, Hp, Wp)


def memn2n_reference(stories, queries, A, B, C, H, W, *, hops=3):
    """Pure-JAX reference with the same bf16 operand quantization (f32 accumulate)."""
    bf16 = jnp.bfloat16
    st = stories.astype(bf16)
    q, A, B, C, H, W = (x.astype(bf16) for x in (queries, A, B, C, H, W))
    n, mem, emb = stories.shape
    emb2 = H.shape[0]
    u = jnp.broadcast_to(jnp.dot(q, B, preferred_element_type=jnp.float32), (n, emb2))
    flat = st.reshape(n * mem, emb)
    m = jnp.dot(flat, A, preferred_element_type=jnp.float32).reshape(n, mem, emb2)
    c = jnp.dot(flat, C, preferred_element_type=jnp.float32).reshape(n, mem, emb2)
    for _ in range(hops):
        dotted = jnp.sum(m * u[:, None, :], axis=2)
        probs = jax.nn.softmax(dotted, axis=1)
        o_k = jnp.sum(c * probs[:, :, None], axis=1)
        u = jnp.dot(u.astype(bf16), H, preferred_element_type=jnp.float32) + o_k
    return jnp.dot(u.astype(bf16), W, preferred_element_type=jnp.float32)


def init_params(key, embedding_size=128, key_size=300):
    emb2 = embedding_size * 2
    k = jax.random.split(key, 6)
    std = 0.01
    queries = std * jax.random.normal(k[0], (1, embedding_size), jnp.float32)
    A = std * jax.random.normal(k[1], (embedding_size, emb2), jnp.float32)
    B = std * jax.random.normal(k[2], (embedding_size, emb2), jnp.float32)
    C = std * jax.random.normal(k[3], (embedding_size, emb2), jnp.float32)
    H = std * jax.random.normal(k[4], (emb2, emb2), jnp.float32)
    W = std * jax.random.normal(k[5], (emb2, key_size), jnp.float32)
    return queries, A, B, C, H, W


if __name__ == "__main__":
    embedding_size = 128
    mem_size = 16
    key_size = 300
    hops = 3
    n_episodes = 2

    root = jax.random.PRNGKey(0)
    key_params, key_stories = jax.random.split(root)
    queries, A, B, C, H, W = init_params(key_params, embedding_size, key_size)

    # stories: (num_episodes, mem_size, embedding_size)
    stories = jax.random.normal(key_stories, (n_episodes, mem_size, embedding_size),
                                jnp.float32)

    # One-time weight packing (hoisted out of the per-call forward path).
    ACB, Hp, Wp = jax.block_until_ready(pack_params(A, B, C, H, W))

    fwd = jax.jit(functools.partial(memn2n_forward, hops=hops, key_size=key_size))
    out = jax.block_until_ready(fwd(stories, queries, ACB, Hp, Wp))
    assert out.shape == (n_episodes, key_size), out.shape

    ref = jax.block_until_ready(
        memn2n_reference(stories, queries, A, B, C, H, W, hops=hops))
    assert jnp.all(jnp.isfinite(out))
    assert jnp.allclose(out, ref, rtol=5e-2, atol=1e-4), (
        float(jnp.max(jnp.abs(out - ref))))

    print("KERNEL_OK")
</pallas_src>

<mosaic_0001>
module attributes {stable_mosaic.version = 11 : i64} {
  func.func @memn2n_kernel(%arg0: memref<2x16x128xf32, #tpu.memory_space<vmem>>, %arg1: memref<1x128xf32, #tpu.memory_space<vmem>>, %arg2: memref<128x768xbf16, #tpu.memory_space<vmem>>, %arg3: memref<256x256xbf16, #tpu.memory_space<vmem>>, %arg4: memref<256x384xbf16, #tpu.memory_space<vmem>>, %arg5: memref<2x300xf32, #tpu.memory_space<vmem>>) attributes {dimension_semantics = [], scalar_prefetch = 0 : i64, scratch_operands = 0 : i64, tpu.core_type = #tpu.core_type<tc>} {
    %c0 = arith.constant 0 : index
    %c0_0 = arith.constant 0 : index
    %c0_1 = arith.constant 0 : index
    %0 = vector.load %arg0[%c0, %c0_0, %c0_1] : memref<2x16x128xf32, #tpu.memory_space<vmem>>, vector<2x16x128xf32>
    %1 = vector.shape_cast %0 : vector<2x16x128xf32> to vector<32x128xf32>
    %c0_2 = arith.constant 0 : index
    %c0_3 = arith.constant 0 : index
    %2 = vector.load %arg1[%c0_2, %c0_3] : memref<1x128xf32, #tpu.memory_space<vmem>>, vector<1x128xf32>
    %3 = vector.shape_cast %2 : vector<1x128xf32> to vector<1x128xf32>
    %4 = vector.broadcast %3 : vector<1x128xf32> to vector<8x128xf32>
    %5 = tpu.concatenate %1, %4 in 0 : vector<32x128xf32>, vector<8x128xf32> -> vector<40x128xf32>
    %6 = arith.truncf %5 : vector<40x128xf32> to vector<40x128xbf16>
    %c0_4 = arith.constant 0 : index
    %c0_5 = arith.constant 0 : index
    %7 = vector.load %arg2[%c0_4, %c0_5] : memref<128x768xbf16, #tpu.memory_space<vmem>>, vector<128x768xbf16>
    %cst = arith.constant dense<0.000000e+00> : vector<40x768xf32>
    %8 = tpu.matmul %6, %7, %cst {dimension_numbers = #tpu.dot_dimension_numbers<[1], [0], [0], [1], [0, 0, 1, 1], [], []>} : vector<40x128xbf16>, vector<128x768xbf16>, vector<40x768xf32> -> vector<40x768xf32>
    %9 = vector.extract_strided_slice %8 {offsets = [0, 0], sizes = [32, 256], strides = [1, 1]} : vector<40x768xf32> to vector<32x256xf32>
    %10 = vector.shape_cast %9 : vector<32x256xf32> to vector<2x16x256xf32>
    %11 = vector.extract_strided_slice %8 {offsets = [0, 256], sizes = [32, 256], strides = [1, 1]} : vector<40x768xf32> to vector<32x256xf32>
    %12 = vector.shape_cast %11 : vector<32x256xf32> to vector<2x16x256xf32>
    %13 = vector.extract_strided_slice %8 {offsets = [32, 512], sizes = [1, 256], strides = [1, 1]} : vector<40x768xf32> to vector<1x256xf32>
    %14 = vector.shape_cast %13 : vector<1x256xf32> to vector<1x256xf32>
    %15 = vector.broadcast %14 : vector<1x256xf32> to vector<2x256xf32>
    %c0_6 = arith.constant 0 : index
    %c0_7 = arith.constant 0 : index
    %16 = vector.load %arg3[%c0_6, %c0_7] : memref<256x256xbf16, #tpu.memory_space<vmem>>, vector<256x256xbf16>
    %17 = vector.shape_cast %15 : vector<2x256xf32> to vector<2x1x256xf32>
    %18 = vector.broadcast %17 : vector<2x1x256xf32> to vector<2x16x256xf32>
    %19 = arith.mulf %10, %18 : vector<2x16x256xf32>
    %cst_8 = arith.constant dense<0.000000e+00> : vector<2x16xf32>
    %20 = vector.multi_reduction <add>, %19, %cst_8 [2] : vector<2x16x256xf32> to vector<2x16xf32>
    %21 = vector.shape_cast %20 : vector<2x16xf32> to vector<2x16x1xf32>
    %cst_9 = arith.constant dense<0xFF800000> : vector<2x1xf32>
    %22 = vector.multi_reduction <maximumf>, %21, %cst_9 [1] : vector<2x16x1xf32> to vector<2x1xf32>
    %23 = vector.shape_cast %22 : vector<2x1xf32> to vector<2x1x1xf32>
    %24 = vector.broadcast %23 : vector<2x1x1xf32> to vector<2x16x1xf32>
    %25 = arith.subf %21, %24 : vector<2x16x1xf32>
    %26 = math.exp %25 : vector<2x16x1xf32>
    %cst_10 = arith.constant dense<0.000000e+00> : vector<2x1xf32>
    %27 = vector.multi_reduction <add>, %26, %cst_10 [1] : vector<2x16x1xf32> to vector<2x1xf32>
    %28 = vector.shape_cast %27 : vector<2x1xf32> to vector<2x1x1xf32>
    %29 = vector.broadcast %28 : vector<2x1x1xf32> to vector<2x16x1xf32>
    %30 = arith.divf %26, %29 : vector<2x16x1xf32>
    %31 = vector.broadcast %30 : vector<2x16x1xf32> to vector<2x16x256xf32>
    %32 = arith.mulf %12, %31 : vector<2x16x256xf32>
    %cst_11 = arith.constant dense<0.000000e+00> : vector<2x256xf32>
    %33 = vector.multi_reduction <add>, %32, %cst_11 [1] : vector<2x16x256xf32> to vector<2x256xf32>
    %34 = arith.truncf %15 : vector<2x256xf32> to vector<2x256xbf16>
    %cst_12 = arith.constant dense<0.000000e+00> : vector<2x256xf32>
    %35 = tpu.matmul %34, %16, %cst_12 {dimension_numbers = #tpu.dot_dimension_numbers<[1], [0], [0], [1], [0, 0, 1, 1], [], []>} : vector<2x256xbf16>, vector<256x256xbf16>, vector<2x256xf32> -> vector<2x256xf32>
    %36 = arith.addf %35, %33 : vector<2x256xf32>
    %37 = vector.shape_cast %36 : vector<2x256xf32> to vector<2x1x256xf32>
    %38 = vector.broadcast %37 : vector<2x1x256xf32> to vector<2x16x256xf32>
    %39 = arith.mulf %10, %38 : vector<2x16x256xf32>
    %cst_13 = arith.constant dense<0.000000e+00> : vector<2x16xf32>
    %40 = vector.multi_reduction <add>, %39, %cst_13 [2] : vector<2x16x256xf32> to vector<2x16xf32>
    %41 = vector.shape_cast %40 : vector<2x16xf32> to vector<2x16x1xf32>
    %cst_14 = arith.constant dense<0xFF800000> : vector<2x1xf32>
    %42 = vector.multi_reduction <maximumf>, %41, %cst_14 [1] : vector<2x16x1xf32> to vector<2x1xf32>
    %43 = vector.shape_cast %42 : vector<2x1xf32> to vector<2x1x1xf32>
    %44 = vector.broadcast %43 : vector<2x1x1xf32> to vector<2x16x1xf32>
    %45 = arith.subf %41, %44 : vector<2x16x1xf32>
    %46 = math.exp %45 : vector<2x16x1xf32>
    %cst_15 = arith.constant dense<0.000000e+00> : vector<2x1xf32>
    %47 = vector.multi_reduction <add>, %46, %cst_15 [1] : vector<2x16x1xf32> to vector<2x1xf32>
    %48 = vector.shape_cast %47 : vector<2x1xf32> to vector<2x1x1xf32>
    %49 = vector.broadcast %48 : vector<2x1x1xf32> to vector<2x16x1xf32>
    %50 = arith.divf %46, %49 : vector<2x16x1xf32>
    %51 = vector.broadcast %50 : vector<2x16x1xf32> to vector<2x16x256xf32>
    %52 = arith.mulf %12, %51 : vector<2x16x256xf32>
    %cst_16 = arith.constant dense<0.000000e+00> : vector<2x256xf32>
    %53 = vector.multi_reduction <add>, %52, %cst_16 [1] : vector<2x16x256xf32> to vector<2x256xf32>
    %54 = arith.truncf %36 : vector<2x256xf32> to vector<2x256xbf16>
    %cst_17 = arith.constant dense<0.000000e+00> : vector<2x256xf32>
    %55 = tpu.matmul %54, %16, %cst_17 {dimension_numbers = #tpu.dot_dimension_numbers<[1], [0], [0], [1], [0, 0, 1, 1], [], []>} : vector<2x256xbf16>, vector<256x256xbf16>, vector<2x256xf32> -> vector<2x256xf32>
    %56 = arith.addf %55, %53 : vector<2x256xf32>
    %57 = vector.shape_cast %56 : vector<2x256xf32> to vector<2x1x256xf32>
    %58 = vector.broadcast %57 : vector<2x1x256xf32> to vector<2x16x256xf32>
    %59 = arith.mulf %10, %58 : vector<2x16x256xf32>
    %cst_18 = arith.constant dense<0.000000e+00> : vector<2x16xf32>
    %60 = vector.multi_reduction <add>, %59, %cst_18 [2] : vector<2x16x256xf32> to vector<2x16xf32>
    %61 = vector.shape_cast %60 : vector<2x16xf32> to vector<2x16x1xf32>
    %cst_19 = arith.constant dense<0xFF800000> : vector<2x1xf32>
    %62 = vector.multi_reduction <maximumf>, %61, %cst_19 [1] : vector<2x16x1xf32> to vector<2x1xf32>
    %63 = vector.shape_cast %62 : vector<2x1xf32> to vector<2x1x1xf32>
    %64 = vector.broadcast %63 : vector<2x1x1xf32> to vector<2x16x1xf32>
    %65 = arith.subf %61, %64 : vector<2x16x1xf32>
    %66 = math.exp %65 : vector<2x16x1xf32>
    %cst_20 = arith.constant dense<0.000000e+00> : vector<2x1xf32>
    %67 = vector.multi_reduction <add>, %66, %cst_20 [1] : vector<2x16x1xf32> to vector<2x1xf32>
    %68 = vector.shape_cast %67 : vector<2x1xf32> to vector<2x1x1xf32>
    %69 = vector.broadcast %68 : vector<2x1x1xf32> to vector<2x16x1xf32>
    %70 = arith.divf %66, %69 : vector<2x16x1xf32>
    %71 = vector.broadcast %70 : vector<2x16x1xf32> to vector<2x16x256xf32>
    %72 = arith.mulf %12, %71 : vector<2x16x256xf32>
    %cst_21 = arith.constant dense<0.000000e+00> : vector<2x256xf32>
    %73 = vector.multi_reduction <add>, %72, %cst_21 [1] : vector<2x16x256xf32> to vector<2x256xf32>
    %74 = arith.truncf %56 : vector<2x256xf32> to vector<2x256xbf16>
    %cst_22 = arith.constant dense<0.000000e+00> : vector<2x256xf32>
    %75 = tpu.matmul %74, %16, %cst_22 {dimension_numbers = #tpu.dot_dimension_numbers<[1], [0], [0], [1], [0, 0, 1, 1], [], []>} : vector<2x256xbf16>, vector<256x256xbf16>, vector<2x256xf32> -> vector<2x256xf32>
    %76 = arith.addf %75, %73 : vector<2x256xf32>
    %77 = arith.truncf %76 : vector<2x256xf32> to vector<2x256xbf16>
    %c0_23 = arith.constant 0 : index
    %c0_24 = arith.constant 0 : index
    %78 = vector.load %arg4[%c0_23, %c0_24] : memref<256x384xbf16, #tpu.memory_space<vmem>>, vector<256x384xbf16>
    %cst_25 = arith.constant dense<0.000000e+00> : vector<2x384xf32>
    %79 = tpu.matmul %77, %78, %cst_25 {dimension_numbers = #tpu.dot_dimension_numbers<[1], [0], [0], [1], [0, 0, 1, 1], [], []>} : vector<2x256xbf16>, vector<256x384xbf16>, vector<2x384xf32> -> vector<2x384xf32>
    %80 = vector.extract_strided_slice %79 {offsets = [0, 0], sizes = [2, 300], strides = [1, 1]} : vector<2x384xf32> to vector<2x300xf32>
    %c0_26 = arith.constant 0 : index
    %c0_27 = arith.constant 0 : index
    %81 = vector.load %arg5[%c0_26, %c0_27] : memref<2x300xf32, #tpu.memory_space<vmem>>, vector<2x300xf32>
    tpu.vector_store %arg5[%c0_26, %c0_27], %80 {strides = array<i32>} : memref<2x300xf32, #tpu.memory_space<vmem>>, vector<2x300xf32>,
    return
  }
}

</mosaic_0001>

<bundles_post_ra>
// kernel: memn2n_forward.1
= control target key start
LH: loop header
LB: loop body
LE: loop exit
PB: predicated region body
PF: predicated region fallthrough
CT: control target
= control target key end

     0   :  { %10 = vsyncpa [#allocation3], 0  ;;  %s2708_s0 = inlined_call_operand.hbm [shape: f32[2,16,128], index: 0, kind: input, shape index: {}]   ;;  %s2709_s1 = inlined_call_operand.vmem [shape: f32[1,128], index: 1, kind: input, shape index: {}]   ;;  %s2710_s2 = inlined_call_operand.hbm [shape: bf16[128,768], index: 2, kind: input, shape index: {}]   ;;  %s2711_s3 = inlined_call_operand.hbm [shape: bf16[256,256], index: 3, kind: input, shape index: {}]   ;;  %s2712_s4 = inlined_call_operand.hbm [shape: bf16[256,384], index: 4, kind: input, shape index: {}]   ;;  %s2713_s5 = inlined_call_operand.hbm [shape: f32[2,300], index: 5, kind: output, shape index: {}]  }
   0x1   :  { %11 = vsyncpa [#allocation6], 0 }
   0x2   :  { %12 = vsyncpa [#allocation9], 0 }
   0x3   :  { %13 = vsyncpa [#allocation4], 0  ;;  %s2294_s18 = smov [#allocation5]   ;;  %s2176_s22 = scalar_lea.hbm %s2710_s2, 6144 }
   0x4   :  { %s33_s19 = sshll.u32 %s2294_s18, 4  ;;  %p2177_p0 = scmp.ne.s32.totalorder %s2710_s2, %s2176_s22  ;;  %s34_s19 = int_to_ptr.vmem [resolvable:$true] %s33_s19 }
   0x5   :  { %p2180_p1 = scmp.lt.u32.totalorder %s2176_s22, %s2710_s2 }
   0x7   :  { %p2182_p2 = pnand %p2180_p1, %p2177_p0 }
   0x9   :  { %2185 = shalt.err (!%p2182_p2)
}
   0xa   :  { %s2186_s27 = scalar_lea.vmem %s34_s19, 6144  ;;  %p2191_p4 = scmp.lt.s32.totalorder %s34_s19, %s34_s19 }
   0xb   :  { %p2187_p3 = scmp.ne.s32.totalorder %s34_s19, %s2186_s27  ;;  %p2192_p5 = scmp.lt.s32.totalorder %s2186_s27, %s2186_s27 }
   0xd   :  { %p2193_p6 = por %p2192_p5, %p2191_p4 }
   0xf   :  { %p2194_p7 = pnand %p2193_p6, %p2187_p3 }
  0x11   :  { %2197 = shalt.err (!%p2194_p7)
}
  0x12   :  { %s2295_s28 = smov 384   ;;  %s2296_s29 = smov 24  }
  0x13   :  { %39 = dma.hbm_to_vmem [thread:$0]  %s2710_s2, 6144, %s34_s19, [#allocation6], %s2295_s28, %s2295_s28, %s2296_s29  }
  0x14   :  { %s2297_s7 = smov [#allocation2]   ;;  %s2198_s11 = scalar_lea.hbm %s2708_s0, 512 }
  0x15   :  { %s19_s8 = sshll.u32 %s2297_s7, 4  ;;  %p2199_p8 = scmp.ne.s32.totalorder %s2708_s0, %s2198_s11  ;;  %s20_s8 = int_to_ptr.vmem [resolvable:$true] %s19_s8 }
  0x16   :  { %p2202_p9 = scmp.lt.u32.totalorder %s2198_s11, %s2708_s0 }
  0x18   :  { %p2204_p10 = pnand %p2202_p9, %p2199_p8 }
  0x1a   :  { %2207 = shalt.err (!%p2204_p10)
}
  0x1b   :  { %s2208_s16 = scalar_lea.vmem %s20_s8, 512  ;;  %p2213_p12 = scmp.lt.s32.totalorder %s20_s8, %s20_s8 }
  0x1c   :  { %p2209_p11 = scmp.ne.s32.totalorder %s20_s8, %s2208_s16  ;;  %p2214_p13 = scmp.lt.s32.totalorder %s2208_s16, %s2208_s16 }
  0x1e   :  { %p2215_p0 = por %p2214_p13, %p2213_p12 }
  0x20   :  { %p2216_p1 = pnand %p2215_p0, %p2209_p11 }
  0x22   :  { %2219 = shalt.err (!%p2216_p1)
}
  0x23   :  { %s2298_s2 = smov 128   ;;  %s2299_s17 = smov 8  }
  0x24   :  { %25 = dma.hbm_to_vmem [thread:$0]  %s2708_s0, 512, %s20_s8, [#allocation3], %s2298_s2, %s2298_s2, %s2299_s17  }
  0x25   :  { %s2300_s20 = smov [#allocation7]   ;;  %s2301_s22 = smov [#allocation8]  }
  0x26   :  { %s45_s21 = sshll.u32 %s2300_s20, 4  ;;  %s57_s23 = sshll.u32 %s2301_s22, 4  ;;  %s46_s21 = int_to_ptr.vmem [resolvable:$true] %s45_s21  ;;  %s2362_s23 = int_to_ptr.vmem [resolvable:$true] %s57_s23 }
  0x27   :  { %s2220_s26 = scalar_lea.hbm %s2711_s3, 4096 }
  0x28   :  { %p2221_p2 = scmp.ne.s32.totalorder %s2711_s3, %s2220_s26  ;;  %p2224_p3 = scmp.lt.u32.totalorder %s2220_s26, %s2711_s3 }
  0x2a   :  { %p2226_p4 = pnand %p2224_p3, %p2221_p2 }
  0x2c   :  { %2229 = shalt.err (!%p2226_p4)
}
  0x2d   :  { %s2230_s0 = scalar_lea.vmem %s46_s21, 4096  ;;  %p2235_p6 = scmp.lt.s32.totalorder %s46_s21, %s46_s21 }
  0x2e   :  { %p2231_p5 = scmp.ne.s32.totalorder %s46_s21, %s2230_s0  ;;  %p2236_p7 = scmp.lt.s32.totalorder %s2230_s0, %s2230_s0 }
  0x30   :  { %p2237_p8 = por %p2236_p7, %p2235_p6 }
  0x32   :  { %p2238_p9 = pnand %p2237_p8, %p2231_p5 }
  0x34   :  { %2241 = shalt.err (!%p2238_p9)
}
  0x35   :  { %51 = dma.hbm_to_vmem [thread:$0]  %s2711_s3, 4096, %s46_s21, [#allocation6], %s2298_s2, %s2298_s2, %s2299_s17  }
  0x36   :  { %s2242_s10 = scalar_lea.hbm %s2712_s4, 6144 }
  0x37   :  { %p2243_p10 = scmp.ne.s32.totalorder %s2712_s4, %s2242_s10  ;;  %p2246_p11 = scmp.lt.u32.totalorder %s2242_s10, %s2712_s4 }
  0x39   :  { %p2248_p12 = pnand %p2246_p11, %p2243_p10 }
  0x3b   :  { %2251 = shalt.err (!%p2248_p12)
}
  0x3c   :  { %s2252_s15 = scalar_lea.vmem %s2362_s23, 6144  ;;  %p2257_p0 = scmp.lt.s32.totalorder %s2362_s23, %s2362_s23 }
  0x3d   :  { %p2253_p13 = scmp.ne.s32.totalorder %s2362_s23, %s2252_s15  ;;  %p2258_p1 = scmp.lt.s32.totalorder %s2252_s15, %s2252_s15 }
  0x3f   :  { %p2259_p2 = por %p2258_p1, %p2257_p0 }
  0x41   :  { %p2260_p3 = pnand %p2259_p2, %p2253_p13 }
  0x43   :  { %2263 = shalt.err (!%p2260_p3)
}
  0x44   :  { %s2302_s3 = smov 192   ;;  %s2303_s16 = smov 12  }
  0x45   :  { %63 = dma.hbm_to_vmem [thread:$0]  %s2712_s4, 6144, %s2362_s23, [#allocation9], %s2302_s3, %s2302_s3, %s2303_s16  }
  0x46   :  { %2286 = dma.done.wait [#allocation3], 512  }
  0x47   :  { %2287 = vsyncadd [#allocation3], 4294966784 }
  0x48   :  { %2288 = dma.done.wait [#allocation6], 10240  }
  0x49   :  { %2289 = vsyncadd [#allocation6], 4294957056 }
  0x4a   :  { %2290 = dma.done.wait [#allocation9], 6144  }
  0x4b   :  { %2291 = vsyncadd [#allocation9], 4294961152  ;;  %v2304_v0 = vmov 0   ;;  %v1956_v1 = vld [vmem:[#allocation5 + $0x4] ss:$24 sps:$4 sm:$0xff]   ;;  %v78_v21 = vld [vmem:[#allocation2 + $0x8] sm:$0xff] }
  0x4c   :  { %411 = vmatprep.mubr.bf16.mxu0 %v2304_v0  ;;  %470 = vmatprep.mubr.bf16.mxu1 %v2304_v0  ;;  %v1958_v2 = vld [vmem:[#allocation5] ss:$24 sps:$4 sm:$0xff]   ;;  %v1959_v3 = vld [vmem:[#allocation5 + $0x34] ss:$24 sps:$4 sm:$0xff]   ;;  %v1961_v4 = vld [vmem:[#allocation5 + $0x30] ss:$24 sps:$4 sm:$0xff]  }
  0x4d   :  { %379 = vmatprep.subr.bf16.mxu0 %v1956_v1  ;;  %v1962_v5 = vld [vmem:[#allocation5 + $0x64] ss:$24 sps:$4 sm:$0xff]   ;;  %v1964_v6 = vld [vmem:[#allocation5 + $0x60] ss:$24 sps:$4 sm:$0xff]   ;;  %v1965_v7 = vld [vmem:[#allocation5 + $0x94] ss:$24 sps:$4 sm:$0xff]  }
  0x4e   :  { %380 = vmatpush1.bf16.msra.mxu0 %v1958_v2  ;;  %v1967_v8 = vld [vmem:[#allocation5 + $0x90] ss:$24 sps:$4 sm:$0xff]   ;;  %v1968_v9 = vld [vmem:[#allocation5 + $0xc4] ss:$24 sps:$4 sm:$0xff]   ;;  %v1970_v10 = vld [vmem:[#allocation5 + $0xc0] ss:$24 sps:$4 sm:$0xff]  }
  0x4f   :  { %381 = vmatprep.subr.bf16.mxu0 %v1959_v3  ;;  %v1971_v11 = vld [vmem:[#allocation5 + $0xf4] ss:$24 sps:$4 sm:$0xff]   ;;  %v1973_v12 = vld [vmem:[#allocation5 + $0xf0] ss:$24 sps:$4 sm:$0xff]   ;;  %v1974_v13 = vld [vmem:[#allocation5 + $0x124] ss:$24 sps:$4 sm:$0xff]  }
  0x50   :  { %v1976_v14 = vld [vmem:[#allocation5 + $0x120] ss:$24 sps:$4 sm:$0xff]   ;;  %v1977_v15 = vld [vmem:[#allocation5 + $0x154] ss:$24 sps:$4 sm:$0xff]   ;;  %v1979_v18 = vld [vmem:[#allocation5 + $0x150] ss:$24 sps:$4 sm:$0xff]  }
  0x51   :  { %v2004_v16 = vld [vmem:[#allocation5 + $0xc] ss:$24 sps:$4 sm:$0xff]   ;;  %v2006_v17 = vld [vmem:[#allocation5 + $0x8] ss:$24 sps:$4 sm:$0xff]   ;;  %v2007_v20 = vld [vmem:[#allocation5 + $0x3c] ss:$24 sps:$4 sm:$0xff]  }
  0x52   :  { %382 = vmatpush1.bf16.msra.mxu0 %v1961_v4  ;;  %v77_v19 = vld [vmem:[#allocation2] sm:$0xff]  ;;  %438 = vmatprep.subr.bf16.mxu1 %v2004_v16  ;;  %v2009_v22 = vld [vmem:[#allocation5 + $0x38] ss:$24 sps:$4 sm:$0xff]   ;;  %v1982_v24 = vld [vmem:[#allocation5 + $0x14] ss:$24 sps:$4 sm:$0xff]   ;;  %vm903_vm0 = vcmask 1041409  }
  0x53   :  { %383 = vmatprep.subr.bf16.mxu0 %v1962_v5  ;;  %439 = vmatpush1.bf16.msra.mxu1 %v2006_v17  ;;  %v2010_v23 = vld [vmem:[#allocation5 + $0x6c] ss:$24 sps:$4 sm:$0xff]   ;;  %v2395_v25 = vpack.c.bf16 %v78_v21, %v77_v19  ;;  %v1980_v26 = vld [vmem:[#allocation5 + $0x10] ss:$24 sps:$4 sm:$0xff]   ;;  %v2013_v29 = vld [vmem:[#allocation5 + $0x9c] ss:$24 sps:$4 sm:$0xff]  }
  0x54   :  { %440 = vmatprep.subr.bf16.mxu1 %v2007_v20  ;;  %v2012_v27 = vld [vmem:[#allocation5 + $0x68] ss:$24 sps:$4 sm:$0xff]   ;;  %v1985_v28 = vld [vmem:[#allocation5 + $0x44] ss:$24 sps:$4 sm:$0xff]   ;;  %v79_v31 = vld [vmem:[#allocation2 + $0x10] sm:$0xff]  ;;  %vm1768_vm1 = vcmask 1041408  }
  0x55   :  { %v1983_v30 = vld [vmem:[#allocation5 + $0x40] ss:$24 sps:$4 sm:$0xff]   ;;  %v2016_v34 = vld [vmem:[#allocation5 + $0xcc] ss:$24 sps:$4 sm:$0xff]   ;;  %v1986_v36 = vld [vmem:[#allocation5 + $0x70] ss:$24 sps:$4 sm:$0xff]  }
  0x56   :  { %384 = vmatpush1.bf16.msra.mxu0 %v1964_v6  ;;  %v80_v32 = vld [vmem:[#allocation2 + $0x18] sm:$0xff]  ;;  %v1988_v35 = vld [vmem:[#allocation5 + $0x74] ss:$24 sps:$4 sm:$0xff]   ;;  %v2018_v37 = vld [vmem:[#allocation5 + $0xc8] ss:$24 sps:$4 sm:$0xff]   ;;  %vm1769_vm2 = vcmask 1043458  }
  0x57   :  { %385 = vmatprep.subr.bf16.mxu0 %v1965_v7  ;;  %441 = vmatpush1.bf16.msra.mxu1 %v2009_v22  ;;  %v2015_v33 = vld [vmem:[#allocation5 + $0x98] ss:$24 sps:$4 sm:$0xff]   ;;  %v1991_v38 = vld [vmem:[#allocation5 + $0xa4] ss:$24 sps:$4 sm:$0xff]   ;;  %v2399_v39 = vpack.c.bf16 %v80_v32, %v79_v31  ;;  %v1791_v43 = vld [vmem:[%s2709_s1] ss:$0 sm:$0xff] }
  0x58   :  { %442 = vmatprep.subr.bf16.mxu1 %v2010_v23  ;;  %v2019_v40 = vld [vmem:[#allocation5 + $0xfc] ss:$24 sps:$4 sm:$0xff]   ;;  %v2021_v41 = vld [vmem:[#allocation5 + $0xf8] ss:$24 sps:$4 sm:$0xff]   ;;  %v2022_v44 = vld [vmem:[#allocation5 + $0x12c] ss:$24 sps:$4 sm:$0xff]   ;;  %v90_v49 = vpack.c.bf16 %v1791_v43, %v1791_v43 }
  0x59   :  { %v1989_v42 = vld [vmem:[#allocation5 + $0xa0] ss:$24 sps:$4 sm:$0xff]   ;;  %v1994_v45 = vld [vmem:[#allocation5 + $0xd4] ss:$24 sps:$4 sm:$0xff]   ;;  %v1992_v47 = vld [vmem:[#allocation5 + $0xd0] ss:$24 sps:$4 sm:$0xff]  }
  0x5a   :  { %386 = vmatpush1.bf16.msra.mxu0 %v1967_v8  ;;  %v2024_v46 = vld [vmem:[#allocation5 + $0x128] ss:$24 sps:$4 sm:$0xff]   ;;  %v1997_v48 = vld [vmem:[#allocation5 + $0x104] ss:$24 sps:$4 sm:$0xff]   ;;  %v2027_v51 = vld [vmem:[#allocation5 + $0x158] ss:$24 sps:$4 sm:$0xff]  }
  0x5b   :  { %387 = vmatprep.subr.bf16.mxu0 %v1968_v9  ;;  %443 = vmatpush1.bf16.msra.mxu1 %v2012_v27  ;;  %v2025_v50 = vld [vmem:[#allocation5 + $0x15c] ss:$24 sps:$4 sm:$0xff]   ;;  %v1995_v52 = vld [vmem:[#allocation5 + $0x100] ss:$24 sps:$4 sm:$0xff]   ;;  %v2406_v53 = vld [vmem:[#allocation7 + $0x4] ss:$8 sps:$4 sm:$0xff]  }
  0x5c   :  { %444 = vmatprep.subr.bf16.mxu1 %v2013_v29  ;;  %v2000_v54 = vld [vmem:[#allocation5 + $0x134] ss:$24 sps:$4 sm:$0xff]   ;;  %v2409_v55 = vld [vmem:[#allocation7] ss:$8 sps:$4 sm:$0xff]   ;;  %v2003_v58 = vld [vmem:[#allocation5 + $0x164] ss:$24 sps:$4 sm:$0xff]  }
  0x5d   :  { %v1998_v56 = vld [vmem:[#allocation5 + $0x130] ss:$24 sps:$4 sm:$0xff]   ;;  %v2411_v57 = vld [vmem:[#allocation7 + $0x14] ss:$8 sps:$4 sm:$0xff]   ;;  %v2001_v60 = vld [vmem:[#allocation5 + $0x160] ss:$24 sps:$4 sm:$0xff]  }
  0x5e   :  { %388 = vmatpush1.bf16.msra.mxu0 %v1970_v10  ;;  %v2414_v59 = vld [vmem:[#allocation7 + $0x10] ss:$8 sps:$4 sm:$0xff]   ;;  %v2417_v61 = vld [vmem:[#allocation7 + $0x24] ss:$8 sps:$4 sm:$0xff]   ;;  %v2422_v62 = vld [vmem:[#allocation7 + $0x20] ss:$8 sps:$4 sm:$0xff]  }
  0x5f   :  { %389 = vmatprep.subr.bf16.mxu0 %v1971_v11  ;;  %445 = vmatpush1.bf16.msra.mxu1 %v2015_v33  ;;  %v2439_v63 = vld [vmem:[#allocation7 + $0x34] ss:$8 sps:$4 sm:$0xff]   ;;  %v2441_v1 = vld [vmem:[#allocation7 + $0x30] ss:$8 sps:$4 sm:$0xff]   ;;  %v2444_v2 = vld [vmem:[#allocation7 + $0x44] ss:$8 sps:$4 sm:$0xff]  }
  0x60   :  { %446 = vmatprep.subr.bf16.mxu1 %v2016_v34  ;;  %v2448_v3 = vld [vmem:[#allocation7 + $0x40] ss:$8 sps:$4 sm:$0xff]   ;;  %v2456_v4 = vld [vmem:[#allocation7 + $0x50] ss:$8 sps:$4 sm:$0xff]   ;;  %v2461_v5 = vld [vmem:[#allocation7 + $0x64] ss:$8 sps:$4 sm:$0xff]  }
  0x61   :  { %v2464_v6 = vld [vmem:[#allocation7 + $0x60] ss:$8 sps:$4 sm:$0xff]   ;;  %v2468_v7 = vld [vmem:[#allocation7 + $0x74] ss:$8 sps:$4 sm:$0xff]   ;;  %v2472_v8 = vld [vmem:[#allocation7 + $0x70] ss:$8 sps:$4 sm:$0xff]  }
  0x62   :  { %390 = vmatpush1.bf16.msra.mxu0 %v1973_v12  ;;  %v2477_v9 = vld [vmem:[#allocation7 + $0x84] ss:$8 sps:$4 sm:$0xff]   ;;  %v2480_v10 = vld [vmem:[#allocation7 + $0x80] ss:$8 sps:$4 sm:$0xff]   ;;  %v2484_v11 = vld [vmem:[#allocation7 + $0x94] ss:$8 sps:$4 sm:$0xff]  }
  0x63   :  { %391 = vmatprep.subr.bf16.mxu0 %v1974_v13  ;;  %447 = vmatpush1.bf16.msra.mxu1 %v2018_v37  ;;  %v2488_v12 = vld [vmem:[#allocation7 + $0x90] ss:$8 sps:$4 sm:$0xff]   ;;  %v2492_v13 = vld [vmem:[#allocation7 + $0xa4] ss:$8 sps:$4 sm:$0xff]   ;;  %v2519_v19 = vld [vmem:[#allocation7 + $0xd4] ss:$8 sps:$4 sm:$0xff]  }
  0x64   :  { %448 = vmatprep.subr.bf16.mxu1 %v2019_v40  ;;  %v2505_v16 = vld [vmem:[#allocation7 + $0xb0] ss:$8 sps:$4 sm:$0xff]   ;;  %v2508_v17 = vld [vmem:[#allocation7 + $0xc4] ss:$8 sps:$4 sm:$0xff]   ;;  %v2528_v22 = vld [vmem:[#allocation7 + $0xe0] ss:$8 sps:$4 sm:$0xff]  }
  0x65   :  { %v2521_v20 = vld [vmem:[#allocation7 + $0xd0] ss:$8 sps:$4 sm:$0xff]   ;;  %v2524_v21 = vld [vmem:[#allocation7 + $0xe4] ss:$8 sps:$4 sm:$0xff]   ;;  %v2535_v23 = vld [vmem:[#allocation7 + $0xf4] ss:$8 sps:$4 sm:$0xff]  }
  0x66   :  { %392 = vmatpush1.bf16.msra.mxu0 %v1976_v14  ;;  %v2496_v14 = vld [vmem:[#allocation7 + $0xa0] ss:$8 sps:$4 sm:$0xff]   ;;  %vm1770_vm3 = vmor %vm1769_vm2, %vm1768_vm1  ;;  %vm1771_vm4 = vcmask 357380   ;;  %s2307_s1 = smov [#allocation10]  }
  0x67   :  { %393 = vmatprep.subr.bf16.mxu0 %v1977_v15  ;;  %449 = vmatpush1.bf16.msra.mxu1 %v2021_v41  ;;  %v2503_v15 = vld [vmem:[#allocation7 + $0xb4] ss:$8 sps:$4 sm:$0xff]   ;;  %v550_v41 = vlaneseq  ;;  %s1780_s19 = sshll.u32 %s2307_s1, 4  ;;  %vm1772_vm5 = vmor %vm1771_vm4, %vm1770_vm3  ;;  %s1781_s19 = int_to_ptr.vmem [resolvable:$true] %s1780_s19 }
  0x68   :  { %450 = vmatprep.subr.bf16.mxu1 %v2022_v44  ;;  %s2264_s20 = scalar_lea.vmem %s1781_s19, 96  ;;  %p2269_p5 = scmp.lt.s32.totalorder %s1781_s19, %s1781_s19 }
  0x69   :  { %v2560_v44 = vshrl.u32 %v550_v41, 7  ;;  %p2265_p4 = scmp.ne.s32.totalorder %s1781_s19, %s2264_s20  ;;  %p2270_p6 = scmp.lt.s32.totalorder %s2264_s20, %s2264_s20 }
  0x6a   :  { %394 = vmatpush1.bf16.msra.mxu0 %v1979_v18  ;;  %v2512_v18 = vld [vmem:[#allocation7 + $0xc0] ss:$8 sps:$4 sm:$0xff]  }
  0x6b   :  { %497 = vmatprep.subr.bf16.mxu0 %v1982_v24  ;;  %451 = vmatpush1.bf16.msra.mxu1 %v2024_v46  ;;  %v2537_v24 = vld [vmem:[#allocation7 + $0xf0] ss:$8 sps:$4 sm:$0xff]   ;;  %v2305_v46 = vmov 1966171168   ;;  %p2271_p7 = por %p2270_p6, %p2269_p5 }
  0x6c   :  { %452 = vmatprep.subr.bf16.mxu1 %v2025_v50 }
  0x6d   :  { %412 = vmatmul.mubr.bf16.vlgmr.msra.gmra.mrb[0].mxu0 %v2395_v25  ;;  %p2272_p8 = pnand %p2271_p7, %p2265_p4 }
  0x6e   :  { %498 = vmatpush1.bf16.msra.mxu0 %v1980_v26  ;;  %421 = vmatprep.mubr.bf16.mxu0 %v2304_v0 }
  0x6f   :  { %499 = vmatprep.subr.bf16.mxu0 %v1985_v28  ;;  %453 = vmatpush1.bf16.msra.mxu1 %v2027_v51 }
  0x70   :  { %908 = vmatprep.subr.bf16.mxu1 %v2406_v53 }
  0x72   :  { %500 = vmatpush1.bf16.msra.mxu0 %v1983_v30  ;;  %471 = vmatmul.mubr.bf16.vlgmr.msra.gmra.mrb[0].mxu1 %v2395_v25 }
  0x73   :  { %501 = vmatprep.subr.bf16.mxu0 %v1988_v35  ;;  %909 = vmatpush1.bf16.msra.mxu1 %v2409_v55 }
  0x74   :  { %480 = vmatprep.mubr.bf16.mxu1 %v2304_v0  ;;  %910 = vmatprep.subr.bf16.mxu1 %v2411_v57 }
  0x75   :  { %422 = vmatmul.mubr.bf16.gmra.mrb[4].mxu0 %v2399_v39 }
  0x76   :  { %502 = vmatpush1.bf16.msra.mxu0 %v1986_v36  ;;  %431 = vmatprep.mubr.bf16.mxu0 %v2304_v0 }
  0x77   :  { %503 = vmatprep.subr.bf16.mxu0 %v1991_v38  ;;  %911 = vmatpush1.bf16.msra.mxu1 %v2414_v59 }
  0x78   :  { %912 = vmatprep.subr.bf16.mxu1 %v2417_v61 }
  0x7a   :  { %504 = vmatpush1.bf16.msra.mxu0 %v1989_v42  ;;  %481 = vmatmul.mubr.bf16.gmra.mrb[4].mxu1 %v2399_v39 }
  0x7b   :  { %505 = vmatprep.subr.bf16.mxu0 %v1994_v45  ;;  %913 = vmatpush1.bf16.msra.mxu1 %v2422_v62 }
  0x7c   :  { %490 = vmatprep.mubr.bf16.mxu1 %v2304_v0  ;;  %914 = vmatprep.subr.bf16.mxu1 %v2439_v63 }
  0x7d   :  { %432 = vmatmul.mubr.bf16.gmra.mrb[8].mxu0 %v90_v49 }
  0x7e   :  { %506 = vmatpush1.bf16.msra.mxu0 %v1992_v47  ;;  %529 = vmatprep.mubr.bf16.mxu0 %v2304_v0  ;;  %v594_v47 = vunpack.c.l.s4 %v2305_v46 }
  0x7f   :  { %507 = vmatprep.subr.bf16.mxu0 %v1997_v48  ;;  %915 = vmatpush1.bf16.msra.mxu1 %v2441_v1 }
  0x80   :  { %916 = vmatprep.subr.bf16.mxu1 %v2444_v2  ;;  %v595_v50 = vunpack.c.0.s8 %v594_v47 }
  0x82   :  { %508 = vmatpush1.bf16.msra.mxu0 %v1995_v52  ;;  %491 = vmatmul.mubr.bf16.gmra.mrb[8].mxu1 %v90_v49 }
  0x83   :  { %509 = vmatprep.subr.bf16.mxu0 %v2000_v54  ;;  %917 = vmatpush1.bf16.msra.mxu1 %v2448_v3 }
  0x86   :  { %510 = vmatpush1.bf16.msra.mxu0 %v1998_v56  ;;  %v2568_v56 = vsub.s32 %v595_v50, %v2560_v44 }
  0x87   :  { %511 = vmatprep.subr.bf16.mxu0 %v2003_v58 }
  0x8a   :  { %512 = vmatpush1.bf16.msra.mxu0 %v2001_v60 }
  0x8b   :  { %1106 = vmatprep.subr.bf16.mxu0 %v2406_v53 }
  0x8d   :  { %530 = vmatmul.mubr.bf16.vlgmr.msra.gmra.mrb[12].mxu0 %v2395_v25 }
  0x8e   :  { %535 = vmatprep.mubr.bf16.mxu0 %v2304_v0  ;;  %1107 = vmatpush1.bf16.msra.mxu0 %v2409_v55 }
  0x8f   :  { %1108 = vmatprep.subr.bf16.mxu0 %v2411_v57 }
  0x92   :  { %1109 = vmatpush1.bf16.msra.mxu0 %v2414_v59 }
  0x93   :  { %1110 = vmatprep.subr.bf16.mxu0 %v2417_v61 }
  0x95   :  { %536 = vmatmul.mubr.bf16.gmra.mrb[16].mxu0 %v2399_v39 }
  0x96   :  { %541 = vmatprep.mubr.bf16.mxu0 %v2304_v0  ;;  %1111 = vmatpush1.bf16.msra.mxu0 %v2422_v62  ;;  %v2452_v0 = vld [vmem:[#allocation7 + $0x54] ss:$8 sps:$4 sm:$0xff]  }
  0x97   :  { %1112 = vmatprep.subr.bf16.mxu0 %v2439_v63  ;;  %918 = vmatprep.subr.bf16.mxu1 %v2452_v0 }
  0x98   :  { %919 = vmatpush1.bf16.msra.mxu1 %v2456_v4 }
  0x99   :  { %920 = vmatprep.subr.bf16.mxu1 %v2461_v5 }
  0x9a   :  { %1113 = vmatpush1.bf16.msra.mxu0 %v2441_v1 }
  0x9b   :  { %1114 = vmatprep.subr.bf16.mxu0 %v2444_v2 }
  0x9c   :  { %921 = vmatpush1.bf16.msra.mxu1 %v2464_v6 }
  0x9d   :  { %542 = vmatmul.mubr.bf16.gmra.mrb[20].mxu0 %v90_v49  ;;  %922 = vmatprep.subr.bf16.mxu1 %v2468_v7  ;;  %v2563_v49 = vsub.s32 0, %v2560_v44 }
  0x9e   :  { %1115 = vmatpush1.bf16.msra.mxu0 %v2448_v3 }
  0x9f   :  { %1116 = vmatprep.subr.bf16.mxu0 %v2452_v0 }
  0xa0   :  { %923 = vmatpush1.bf16.msra.mxu1 %v2472_v8 }
  0xa1   :  { %924 = vmatprep.subr.bf16.mxu1 %v2477_v9 }
  0xa2   :  { %1117 = vmatpush1.bf16.msra.mxu0 %v2456_v4 }
  0xa3   :  { %1118 = vmatprep.subr.bf16.mxu0 %v2461_v5 }
  0xa4   :  { %925 = vmatpush1.bf16.msra.mxu1 %v2480_v10 }
  0xa5   :  { %926 = vmatprep.subr.bf16.mxu1 %v2484_v11 }
  0xa6   :  { %1119 = vmatpush1.bf16.msra.mxu0 %v2464_v6 }
  0xa7   :  { %1120 = vmatprep.subr.bf16.mxu0 %v2468_v7 }
  0xa8   :  { %927 = vmatpush1.bf16.msra.mxu1 %v2488_v12 }
  0xa9   :  { %928 = vmatprep.subr.bf16.mxu1 %v2492_v13 }
  0xaa   :  { %1121 = vmatpush1.bf16.msra.mxu0 %v2472_v8 }
  0xab   :  { %1122 = vmatprep.subr.bf16.mxu0 %v2477_v9 }
  0xac   :  { %929 = vmatpush1.bf16.msra.mxu1 %v2496_v14 }
  0xad   :  { %930 = vmatprep.subr.bf16.mxu1 %v2503_v15 }
  0xae   :  { %1123 = vmatpush1.bf16.msra.mxu0 %v2480_v10 }
  0xaf   :  { %1124 = vmatprep.subr.bf16.mxu0 %v2484_v11 }
  0xb0   :  { %931 = vmatpush1.bf16.msra.mxu1 %v2505_v16 }
  0xb1   :  { %932 = vmatprep.subr.bf16.mxu1 %v2508_v17 }
  0xb2   :  { %1125 = vmatpush1.bf16.msra.mxu0 %v2488_v12 }
  0xb3   :  { %1126 = vmatprep.subr.bf16.mxu0 %v2492_v13 }
  0xb4   :  { %933 = vmatpush1.bf16.msra.mxu1 %v2512_v18 }
  0xb5   :  { %934 = vmatprep.subr.bf16.mxu1 %v2519_v19 }
  0xb6   :  { %1127 = vmatpush1.bf16.msra.mxu0 %v2496_v14 }
  0xb7   :  { %1128 = vmatprep.subr.bf16.mxu0 %v2503_v15 }
  0xb8   :  { %935 = vmatpush1.bf16.msra.mxu1 %v2521_v20 }
  0xb9   :  { %936 = vmatprep.subr.bf16.mxu1 %v2524_v21 }
  0xba   :  { %1129 = vmatpush1.bf16.msra.mxu0 %v2505_v16 }
  0xbb   :  { %1130 = vmatprep.subr.bf16.mxu0 %v2508_v17 }
  0xbc   :  { %937 = vmatpush1.bf16.msra.mxu1 %v2528_v22 }
  0xbd   :  { %938 = vmatprep.subr.bf16.mxu1 %v2535_v23 }
  0xbe   :  { %1131 = vmatpush1.bf16.msra.mxu0 %v2512_v18 }
  0xbf   :  { %1132 = vmatprep.subr.bf16.mxu0 %v2519_v19 }
  0xc0   :  { %939 = vmatpush1.bf16.msra.mxu1 %v2537_v24 }
  0xc1   :  { %1304 = vmatprep.subr.bf16.mxu1 %v2406_v53 }
  0xc2   :  { %1133 = vmatpush1.bf16.msra.mxu0 %v2521_v20 }
  0xc3   :  { %1134 = vmatprep.subr.bf16.mxu0 %v2524_v21 }
  0xc6   :  { %1135 = vmatpush1.bf16.msra.mxu0 %v2528_v22 }
  0xc7   :  { %1136 = vmatprep.subr.bf16.mxu0 %v2535_v23 }
  0xca   :  { %1137 = vmatpush1.bf16.msra.mxu0 %v2537_v24 }
 0x140   :  { %v2544_v25 = vpop.f32.mrb[0].mxu0 }
 0x141   :  { %v2546_v26 = vpop.f32.mrb[1].mxu0 }
 0x142   :  { %v2548_v27 = vpop.f32.mrb[2].mxu0 }
 0x143   :  { %v2550_v28 = vpop.f32.mrb[3].mxu0 }
 0x148   :  { %v2552_v29 = vpop.f32.mrb[4].mxu0 }
 0x149   :  { %v2554_v30 = vpop.f32.mrb[5].mxu0 }
 0x14a   :  { %v2556_v31 = vpop.f32.mrb[6].mxu0 }
 0x14b   :  { %v2558_v32 = vpop.f32.mrb[7].mxu0 }
 0x150   :  { %v433_v33 = vpop.f32.mrb[8].mxu0 }
 0x151   :  { %v434_v34 = vpop.f32.mrb[9].mxu0 }
 0x152   :  { %v435_v35 = vpop.f32.mrb[10].mxu0 }
 0x153   :  { %v436_v36 = vpop.f32.mrb[11].mxu0 }
 0x160   :  { %v531_v37 = vpop.f32.mrb[12].mxu0 }
 0x161   :  { %v532_v38 = vpop.f32.mrb[13].mxu0  ;;  %v2572_v37 = vsub.s32 1, %v2560_v44 }
 0x162   :  { %v533_v39 = vpop.f32.mrb[14].mxu0 }
 0x163   :  { %v534_v40 = vpop.f32.mrb[15].mxu0 }
 0x168   :  { %v537_v42 = vpop.f32.mrb[16].mxu0 }
 0x169   :  { %v538_v43 = vpop.f32.mrb[17].mxu0 }
 0x16a   :  { %v539_v45 = vpop.f32.mrb[18].mxu0 }
 0x16b   :  { %v540_v48 = vpop.f32.mrb[19].mxu0 }
 0x170   :  { %v543_v51 = vpop.f32.mrb[20].mxu0 }
 0x171   :  { %v553_v52 = vrot.slane %v543_v51, %v2563_v49  ;;  %v545_v53 = vpop.f32.mrb[21].mxu0 }
 0x172   :  { %v557_v54 = vrot.slane %v545_v53, %v2563_v49  ;;  %v547_v58 = vpop.f32.mrb[22].mxu0 }
 0x173   :  { %v548_v60 = vpop.f32.mrb[23].mxu0  ;;  %v737_v35 = vpack.c.bf16 %v553_v52, %v553_v52 }
 0x174   :  { %v592_v33 = vcombine.low %v553_v52, %v557_v54  ;;  %v738_v34 = vpack.c.bf16 %v557_v54, %v557_v54 }
 0x176   :  { %v599_v36 = vrot.slane %v592_v33, %v2568_v56  ;;  %940 = vmatprep.mubr.bf16.mxu1 %v738_v34 }
 0x177   :  { %941 = vmatmul.mubr.bf16.vlgmr.msra.gmra.mrb[12].mxu1 %v737_v35 }
 0x178   :  { %v600_v38 = vcombine.high %v599_v36, %v599_v36  ;;  %v607_v39 = vrot.slane %v599_v36, %v2568_v56  ;;  %1305 = vmatpush1.bf16.msra.mxu1 %v2409_v55 }
 0x179   :  { %1306 = vmatprep.subr.bf16.mxu1 %v2411_v57 }
 0x17a   :  { %v618_v40 = vrot.slane %v607_v39, %v2563_v49  ;;  %v622_v41 = vrot.slane %v607_v39, %v2572_v37  ;;  %v614_v42 = vrot.slane %v600_v38, %v2568_v56 }
 0x17c   :  { %v635_v43 = vmul.f32 %v618_v40, %v2544_v25  ;;  %v636_v45 = vmul.f32 %v622_v41, %v2546_v26  ;;  %v626_v46 = vrot.slane %v614_v42, %v2563_v49  ;;  %v630_v47 = vrot.slane %v614_v42, %v2572_v37  ;;  %1307 = vmatpush1.bf16.msra.mxu1 %v2414_v59 }
 0x17d   :  { %v637_v55 = vmul.f32 %v618_v40, %v2548_v27  ;;  %v638_v57 = vmul.f32 %v622_v41, %v2550_v28  ;;  %1308 = vmatprep.subr.bf16.mxu1 %v2417_v61  ;;  %v2606_v61 = vpop.f32.mrb[0].mxu1 }
 0x17e   :  { %v643_v48 = vadd.f32 %v636_v45, %v635_v43  ;;  %v639_v50 = vmul.f32 %v626_v46, %v2552_v29  ;;  %v640_v51 = vmul.f32 %v630_v47, %v2554_v30  ;;  %v641_v52 = vmul.f32 %v626_v46, %v2556_v31 }
 0x17f   :  { %v646_v53 = vadd.f32 %v638_v57, %v637_v55  ;;  %v642_v54 = vmul.f32 %v630_v47, %v2558_v32 }
 0x180   :  { %644 = vadd.xlane.f32.xlu0 %v643_v48  ;;  %v649_v58 = vadd.f32 %v640_v51, %v639_v50  ;;  %1309 = vmatpush1.bf16.msra.mxu1 %v2422_v62  ;;  %v2608_v62 = vpop.f32.mrb[1].mxu1 }
 0x181   :  { %v652_v59 = vadd.f32 %v642_v54, %v641_v52  ;;  %1310 = vmatprep.subr.bf16.mxu1 %v2439_v63  ;;  %v2610_v63 = vpop.f32.mrb[2].mxu1 }
 0x182   :  { %650 = vadd.xlane.f32.xlu1 %v649_v58 }
 0x184   :  { %647 = vadd.xlane.f32.xlu0 %v646_v53  ;;  %1311 = vmatpush1.bf16.msra.mxu1 %v2441_v1  ;;  %v2613_v1 = vpop.f32.mrb[3].mxu1 }
 0x185   :  { %1312 = vmatprep.subr.bf16.mxu1 %v2444_v2  ;;  %v2627_v2 = vpop.f32.mrb[4].mxu1 }
 0x186   :  { %653 = vadd.xlane.f32.xlu1 %v652_v59 }
 0x188   :  { %1313 = vmatpush1.bf16.msra.mxu1 %v2448_v3  ;;  %v2629_v3 = vpop.f32.mrb[5].mxu1 }
 0x189   :  { %1314 = vmatprep.subr.bf16.mxu1 %v2452_v0  ;;  %v2631_v0 = vpop.f32.mrb[6].mxu1 }
 0x18c   :  { %1315 = vmatpush1.bf16.msra.mxu1 %v2456_v4  ;;  %v2633_v4 = vpop.f32.mrb[7].mxu1 }
 0x18d   :  { %1316 = vmatprep.subr.bf16.mxu1 %v2461_v5  ;;  %v492_v5 = vpop.f32.mrb[8].mxu1 }
 0x190   :  { %1317 = vmatpush1.bf16.msra.mxu1 %v2464_v6  ;;  %v493_v6 = vpop.f32.mrb[9].mxu1 }
 0x191   :  { %1318 = vmatprep.subr.bf16.mxu1 %v2468_v7  ;;  %v494_v7 = vpop.f32.mrb[10].mxu1 }
 0x194   :  { %1319 = vmatpush1.bf16.msra.mxu1 %v2472_v8  ;;  %v495_v8 = vpop.f32.mrb[11].mxu1 }
 0x195   :  { %1320 = vmatprep.subr.bf16.mxu1 %v2477_v9 }
 0x198   :  { %1321 = vmatpush1.bf16.msra.mxu1 %v2480_v10 }
 0x199   :  { %1322 = vmatprep.subr.bf16.mxu1 %v2484_v11 }
 0x19c   :  { %1323 = vmatpush1.bf16.msra.mxu1 %v2488_v12 }
 0x19d   :  { %1324 = vmatprep.subr.bf16.mxu1 %v2492_v13 }
 0x1a0   :  { %1325 = vmatpush1.bf16.msra.mxu1 %v2496_v14 }
 0x1a1   :  { %1326 = vmatprep.subr.bf16.mxu1 %v2503_v15 }
 0x1a4   :  { %1327 = vmatpush1.bf16.msra.mxu1 %v2505_v16 }
 0x1a5   :  { %1328 = vmatprep.subr.bf16.mxu1 %v2508_v17 }
 0x1a8   :  { %1329 = vmatpush1.bf16.msra.mxu1 %v2512_v18 }
 0x1a9   :  { %1330 = vmatprep.subr.bf16.mxu1 %v2519_v19 }
 0x1ac   :  { %1331 = vmatpush1.bf16.msra.mxu1 %v2521_v20 }
 0x1ad   :  { %1332 = vmatprep.subr.bf16.mxu1 %v2524_v21 }
 0x1b0   :  { %1333 = vmatpush1.bf16.msra.mxu1 %v2528_v22 }
 0x1b1   :  { %1334 = vmatprep.subr.bf16.mxu1 %v2535_v23 }
 0x1b4   :  { %1335 = vmatpush1.bf16.msra.mxu1 %v2537_v24 }
 0x20d   :  { %v645_v9 = vpop.xlane.xlu0 %644 }
 0x20f   :  { %v651_v10 = vpop.xlane.xlu1 %650 }
 0x211   :  { %v648_v11 = vpop.xlane.xlu0 %647 }
 0x212   :  { %v655_v12 = vmax.f32 %v645_v9, %v648_v11 }
 0x213   :  { %v654_v13 = vpop.xlane.xlu1 %653 }
 0x214   :  { %v656_v14 = vrot.slane %v655_v12, 4  ;;  %v662_v15 = vmax.f32 %v651_v10, %v654_v13 }
 0x216   :  { %v657_v16 = vmax.f32 %v655_v12, %v656_v14  ;;  %v663_v17 = vrot.slane %v662_v15, 4 }
 0x218   :  { %v658_v18 = vrot.slane %v657_v16, 2  ;;  %v664_v19 = vmax.f32 %v662_v15, %v663_v17 }
 0x21a   :  { %v659_v20 = vmax.f32 %v657_v16, %v658_v18  ;;  %v665_v21 = vrot.slane %v664_v19, 2 }
 0x21c   :  { %v660_v22 = vrot.slane %v659_v20, 1  ;;  %v666_v23 = vmax.f32 %v664_v19, %v665_v21 }
 0x21e   :  { %v661_v24 = vmax.f32 %v659_v20, %v660_v22  ;;  %v667_v60 = vrot.slane %v666_v23, 1 }
 0x220   :  { %v669_v33 = vsub.f32 %v645_v9, %v661_v24  ;;  %v670_v34 = vsub.f32 %v648_v11, %v661_v24  ;;  %v668_v35 = vmax.f32 %v666_v23, %v667_v60 }
 0x222   :  { %v673_v36 = vmul.f32 1.442695, %v669_v33  ;;  %v675_v38 = vmul.f32 1.442695, %v670_v34  ;;  %v671_v39 = vsub.f32 %v651_v10, %v668_v35  ;;  %v672_v40 = vsub.f32 %v654_v13, %v668_v35 }
 0x224   :  { %2140 = vpow2.f32 %v673_v36  ;;  %v677_v41 = vmul.f32 1.442695, %v671_v39  ;;  %v679_v42 = vmul.f32 1.442695, %v672_v40 }
 0x225   :  { %2142 = vpow2.f32 %v675_v38 }
 0x226   :  { %2144 = vpow2.f32 %v677_v41 }
 0x227   :  { %2146 = vpow2.f32 %v679_v42 }
 0x22e   :  { %v2141_v43 = vpop.eup %2140 }
 0x22f   :  { %v2143_v45 = vpop.eup %2142 }
 0x230   :  { %v2145_v46 = vpop.eup %2144  ;;  %v681_v47 = vadd.f32 %v2143_v45, %v2141_v43 }
 0x231   :  { %v2147_v55 = vpop.eup %2146 }
 0x232   :  { %v682_v57 = vrot.slane %v681_v47, 4  ;;  %v688_v48 = vadd.f32 %v2147_v55, %v2145_v46 }
 0x234   :  { %v683_v50 = vadd.f32 %v682_v57, %v681_v47  ;;  %v689_v51 = vrot.slane %v688_v48, 4 }
 0x236   :  { %v684_v52 = vrot.slane %v683_v50, 2  ;;  %v690_v53 = vadd.f32 %v689_v51, %v688_v48 }
 0x238   :  { %v685_v54 = vadd.f32 %v684_v52, %v683_v50  ;;  %v691_v58 = vrot.slane %v690_v53, 2 }
 0x23a   :  { %v692_v59 = vadd.f32 %v691_v58, %v690_v53  ;;  %v686_v5 = vrot.slane %v685_v54, 1 }
 0x23c   :  { %v687_v6 = vadd.f32 %v686_v5, %v685_v54  ;;  %v693_v7 = vrot.slane %v692_v59, 1 }
 0x23e   :  { %2148 = vrcp.f32 %v687_v6  ;;  %v694_v8 = vadd.f32 %v693_v7, %v692_v59 }
 0x240   :  { %2150 = vrcp.f32 %v694_v8 }
 0x248   :  { %v2149_v9 = vpop.eup %2148 }
 0x249   :  { %v696_v10 = vmul.f32 %v2149_v9, %v2141_v43  ;;  %v697_v11 = vmul.f32 %v2149_v9, %v2143_v45 }
 0x24a   :  { %v2151_v12 = vpop.eup %2150  ;;  %v942_v13 = vpop.f32.mrb[12].mxu1 }
 0x24b   :  { %v701_v14 = vmul.f32 %v696_v10, %v2606_v61  ;;  %v702_v15 = vmul.f32 %v696_v10, %v2608_v62  ;;  %v703_v16 = vmul.f32 %v697_v11, %v2610_v63  ;;  %v704_v17 = vmul.f32 %v697_v11, %v2613_v1  ;;  %v944_v18 = vpop.f32.mrb[13].mxu1 }
 0x24c   :  { %v699_v19 = vmul.f32 %v2151_v12, %v2145_v46  ;;  %v700_v20 = vmul.f32 %v2151_v12, %v2147_v55  ;;  %v946_v21 = vpop.f32.mrb[14].mxu1 }
 0x24d   :  { %v709_v22 = vadd.f32 %v703_v16, %v701_v14  ;;  %v716_v23 = vadd.f32 %v704_v17, %v702_v15  ;;  %v947_v24 = vpop.f32.mrb[15].mxu1 }
 0x24e   :  { %v705_v60 = vmul.f32 %v699_v19, %v2627_v2  ;;  %v706_v33 = vmul.f32 %v699_v19, %v2629_v3  ;;  %v707_v34 = vmul.f32 %v700_v20, %v2631_v0  ;;  %v708_v35 = vmul.f32 %v700_v20, %v2633_v4 }
 0x24f   :  { %v710_v36 = vrot.slane %v709_v22, 4  ;;  %v717_v38 = vrot.slane %v716_v23, 4 }
 0x250   :  { %v723_v39 = vadd.f32 %v707_v34, %v705_v60  ;;  %v730_v40 = vadd.f32 %v708_v35, %v706_v33 }
 0x251   :  { %v711_v41 = vadd.f32 %v710_v36, %v709_v22  ;;  %v718_v42 = vadd.f32 %v717_v38, %v716_v23 }
 0x252   :  { %v724_v43 = vrot.slane %v723_v39, 4  ;;  %v731_v45 = vrot.slane %v730_v40, 4 }
 0x253   :  { %v712_v46 = vrot.slane %v711_v41, 2  ;;  %v719_v47 = vrot.slane %v718_v42, 2 }
 0x254   :  { %v725_v55 = vadd.f32 %v724_v43, %v723_v39  ;;  %v732_v57 = vadd.f32 %v731_v45, %v730_v40 }
 0x255   :  { %v713_v48 = vadd.f32 %v712_v46, %v711_v41  ;;  %v720_v50 = vadd.f32 %v719_v47, %v718_v42 }
 0x256   :  { %v726_v51 = vrot.slane %v725_v55, 2  ;;  %v733_v52 = vrot.slane %v732_v57, 2 }
 0x257   :  { %v714_v53 = vrot.slane %v713_v48, 1  ;;  %v721_v58 = vrot.slane %v720_v50, 1 }
 0x258   :  { %v727_v54 = vadd.f32 %v726_v51, %v725_v55  ;;  %v734_v59 = vadd.f32 %v733_v52, %v732_v57 }
 0x259   :  { %v715_v7 = vadd.f32 %v714_v53, %v713_v48  ;;  %v722_v9 = vadd.f32 %v721_v58, %v720_v50 }
 0x25a   :  { %v728_v5 = vrot.slane %v727_v54, 1  ;;  %v735_v6 = vrot.slane %v734_v59, 1 }
 0x25c   :  { %v729_v8 = vadd.f32 %v728_v5, %v727_v54  ;;  %v736_v10 = vadd.f32 %v735_v6, %v734_v59 }
 0x25e   :  { %v904_v11 = vsel %vm903_vm0, %v729_v8, %v715_v7  ;;  %v905_v12 = vsel %vm903_vm0, %v736_v10, %v722_v9 }
 0x25f   :  { %v943_v14 = vadd.f32 %v942_v13, %v904_v11  ;;  %v945_v15 = vadd.f32 %v944_v18, %v905_v12 }
 0x261   :  { %v1096_v16 = vpack.c.bf16 %v943_v14, %v943_v14  ;;  %v951_v17 = vcombine.low %v943_v14, %v945_v15  ;;  %v1097_v19 = vpack.c.bf16 %v945_v15, %v945_v15 }
 0x263   :  { %v958_v20 = vrot.slane %v951_v17, %v2568_v56  ;;  %1138 = vmatprep.mubr.bf16.mxu0 %v1097_v19 }
 0x264   :  { %1139 = vmatmul.mubr.bf16.vlgmr.msra.gmra.mrb[24].mxu0 %v1096_v16 }
 0x265   :  { %v959_v21 = vcombine.high %v958_v20, %v958_v20  ;;  %v966_v22 = vrot.slane %v958_v20, %v2568_v56 }
 0x267   :  { %v977_v23 = vrot.slane %v966_v22, %v2563_v49  ;;  %v981_v24 = vrot.slane %v966_v22, %v2572_v37  ;;  %v973_v60 = vrot.slane %v959_v21, %v2568_v56 }
 0x269   :  { %v996_v33 = vmul.f32 %v977_v23, %v2548_v27  ;;  %v997_v13 = vmul.f32 %v981_v24, %v2550_v28  ;;  %v994_v18 = vmul.f32 %v977_v23, %v2544_v25  ;;  %v995_v34 = vmul.f32 %v981_v24, %v2546_v26 }
 0x26a   :  { %v985_v35 = vrot.slane %v973_v60, %v2563_v49  ;;  %v989_v36 = vrot.slane %v973_v60, %v2572_v37 }
 0x26b   :  { %v1005_v38 = vadd.f32 %v997_v13, %v996_v33  ;;  %v1002_v39 = vadd.f32 %v995_v34, %v994_v18 }
 0x26c   :  { %v1000_v40 = vmul.f32 %v985_v35, %v2556_v31  ;;  %v1001_v41 = vmul.f32 %v989_v36, %v2558_v32  ;;  %v998_v42 = vmul.f32 %v985_v35, %v2552_v29  ;;  %v999_v43 = vmul.f32 %v989_v36, %v2554_v30 }
 0x26d   :  { %1006 = vadd.xlane.f32.xlu1 %v1005_v38  ;;  %1003 = vadd.xlane.f32.xlu0 %v1002_v39 }
 0x26e   :  { %v1011_v45 = vadd.f32 %v1001_v41, %v1000_v40  ;;  %v1008_v46 = vadd.f32 %v999_v43, %v998_v42 }
 0x271   :  { %1012 = vadd.xlane.f32.xlu1 %v1011_v45  ;;  %1009 = vadd.xlane.f32.xlu0 %v1008_v46 }
 0x2fa   :  { %v1007_v47 = vpop.xlane.xlu1 %1006  ;;  %v1004_v55 = vpop.xlane.xlu0 %1003 }
 0x2fb   :  { %v1014_v57 = vmax.f32 %v1004_v55, %v1007_v47 }
 0x2fd   :  { %v1015_v48 = vrot.slane %v1014_v57, 4 }
 0x2fe   :  { %v1013_v50 = vpop.xlane.xlu1 %1012  ;;  %v1010_v51 = vpop.xlane.xlu0 %1009 }
 0x2ff   :  { %v1016_v52 = vmax.f32 %v1014_v57, %v1015_v48  ;;  %v1021_v53 = vmax.f32 %v1010_v51, %v1013_v50 }
 0x301   :  { %v1017_v54 = vrot.slane %v1016_v52, 2  ;;  %v1022_v58 = vrot.slane %v1021_v53, 4 }
 0x303   :  { %v1018_v59 = vmax.f32 %v1016_v52, %v1017_v54  ;;  %v1023_v5 = vmax.f32 %v1021_v53, %v1022_v58 }
 0x305   :  { %v1019_v6 = vrot.slane %v1018_v59, 1  ;;  %v1024_v7 = vrot.slane %v1023_v5, 2 }
 0x307   :  { %v1020_v8 = vmax.f32 %v1018_v59, %v1019_v6  ;;  %v1025_v9 = vmax.f32 %v1023_v5, %v1024_v7 }
 0x309   :  { %v1028_v10 = vsub.f32 %v1004_v55, %v1020_v8  ;;  %v1029_v11 = vsub.f32 %v1007_v47, %v1020_v8  ;;  %v1026_v12 = vrot.slane %v1025_v9, 1 }
 0x30b   :  { %v1032_v14 = vmul.f32 1.442695, %v1028_v10  ;;  %v1034_v15 = vmul.f32 1.442695, %v1029_v11  ;;  %v1027_v16 = vmax.f32 %v1025_v9, %v1026_v12 }
 0x30d   :  { %2152 = vpow2.f32 %v1032_v14  ;;  %v1030_v17 = vsub.f32 %v1010_v51, %v1027_v16  ;;  %v1031_v19 = vsub.f32 %v1013_v50, %v1027_v16 }
 0x30e   :  { %2154 = vpow2.f32 %v1034_v15 }
 0x30f   :  { %v1036_v20 = vmul.f32 1.442695, %v1030_v17  ;;  %v1038_v21 = vmul.f32 1.442695, %v1031_v19 }
 0x311   :  { %2156 = vpow2.f32 %v1036_v20 }
 0x312   :  { %2158 = vpow2.f32 %v1038_v21 }
 0x317   :  { %v2153_v22 = vpop.eup %2152 }
 0x318   :  { %v2155_v23 = vpop.eup %2154 }
 0x319   :  { %v1040_v24 = vadd.f32 %v2155_v23, %v2153_v22 }
 0x31b   :  { %v2157_v60 = vpop.eup %2156  ;;  %v1041_v33 = vrot.slane %v1040_v24, 4 }
 0x31c   :  { %v2159_v13 = vpop.eup %2158 }
 0x31d   :  { %v1042_v18 = vadd.f32 %v1041_v33, %v1040_v24  ;;  %v1047_v34 = vadd.f32 %v2159_v13, %v2157_v60 }
 0x31f   :  { %v1043_v35 = vrot.slane %v1042_v18, 2  ;;  %v1048_v36 = vrot.slane %v1047_v34, 4 }
 0x321   :  { %v1044_v38 = vadd.f32 %v1043_v35, %v1042_v18  ;;  %v1049_v39 = vadd.f32 %v1048_v36, %v1047_v34 }
 0x323   :  { %v1045_v40 = vrot.slane %v1044_v38, 1  ;;  %v1050_v41 = vrot.slane %v1049_v39, 2 }
 0x325   :  { %v1046_v42 = vadd.f32 %v1045_v40, %v1044_v38  ;;  %v1051_v43 = vadd.f32 %v1050_v41, %v1049_v39 }
 0x327   :  { %2160 = vrcp.f32 %v1046_v42  ;;  %v1052_v45 = vrot.slane %v1051_v43, 1 }
 0x329   :  { %v1053_v46 = vadd.f32 %v1052_v45, %v1051_v43 }
 0x32b   :  { %2162 = vrcp.f32 %v1053_v46 }
 0x331   :  { %v2161_v47 = vpop.eup %2160 }
 0x332   :  { %v1055_v55 = vmul.f32 %v2161_v47, %v2153_v22  ;;  %v1056_v57 = vmul.f32 %v2161_v47, %v2155_v23 }
 0x334   :  { %v1060_v48 = vmul.f32 %v1055_v55, %v2606_v61  ;;  %v1062_v50 = vmul.f32 %v1056_v57, %v2610_v63  ;;  %v1061_v51 = vmul.f32 %v1055_v55, %v2608_v62  ;;  %v1063_v52 = vmul.f32 %v1056_v57, %v2613_v1 }
 0x335   :  { %v2163_v53 = vpop.eup %2162 }
 0x336   :  { %v1058_v54 = vmul.f32 %v2163_v53, %v2157_v60  ;;  %v1059_v58 = vmul.f32 %v2163_v53, %v2159_v13  ;;  %v1068_v59 = vadd.f32 %v1062_v50, %v1060_v48  ;;  %v1075_v5 = vadd.f32 %v1063_v52, %v1061_v51 }
 0x337   :  { %v1140_v6 = vpop.f32.mrb[24].mxu0 }
 0x338   :  { %v1064_v7 = vmul.f32 %v1058_v54, %v2627_v2  ;;  %v1066_v8 = vmul.f32 %v1059_v58, %v2631_v0  ;;  %v1069_v9 = vrot.slane %v1068_v59, 4  ;;  %v1065_v10 = vmul.f32 %v1058_v54, %v2629_v3  ;;  %v1142_v11 = vpop.f32.mrb[25].mxu0 }
 0x339   :  { %v1067_v12 = vmul.f32 %v1059_v58, %v2633_v4  ;;  %v1076_v14 = vrot.slane %v1075_v5, 4  ;;  %v1144_v15 = vpop.f32.mrb[26].mxu0 }
 0x33a   :  { %v1070_v16 = vadd.f32 %v1069_v9, %v1068_v59  ;;  %v1082_v17 = vadd.f32 %v1066_v8, %v1064_v7  ;;  %v1145_v19 = vpop.f32.mrb[27].mxu0 }
 0x33b   :  { %v1077_v20 = vadd.f32 %v1076_v14, %v1075_v5  ;;  %v1089_v21 = vadd.f32 %v1067_v12, %v1065_v10 }
 0x33c   :  { %v1071_v22 = vrot.slane %v1070_v16, 2  ;;  %v1083_v23 = vrot.slane %v1082_v17, 4 }
 0x33d   :  { %v1078_v24 = vrot.slane %v1077_v20, 2  ;;  %v1090_v60 = vrot.slane %v1089_v21, 4 }
 0x33e   :  { %v1072_v33 = vadd.f32 %v1071_v22, %v1070_v16  ;;  %v1084_v13 = vadd.f32 %v1083_v23, %v1082_v17  ;;  %v2090_v22 = vld [vmem:[#allocation8 + $0x64] ss:$12 sps:$4 sm:$0xff]   ;;  %v2088_v23 = vld [vmem:[#allocation8 + $0x60] ss:$12 sps:$4 sm:$0xff]  }
 0x33f   :  { %v1079_v18 = vadd.f32 %v1078_v24, %v1077_v20  ;;  %v1091_v34 = vadd.f32 %v1090_v60, %v1089_v21  ;;  %v2079_v21 = vld [vmem:[#allocation8 + $0x18] ss:$12 sps:$4 sm:$0xff]   ;;  %v2093_v24 = vld [vmem:[#allocation8 + $0x7c] ss:$12 sps:$4 sm:$0xff]  }
 0x340   :  { %v1085_v35 = vrot.slane %v1084_v13, 2  ;;  %v1073_v38 = vrot.slane %v1072_v33, 1  ;;  %v2091_v60 = vld [vmem:[#allocation8 + $0x78] ss:$12 sps:$4 sm:$0xff]  }
 0x341   :  { %v1092_v36 = vrot.slane %v1091_v34, 2  ;;  %v1080_v40 = vrot.slane %v1079_v18, 1 }
 0x342   :  { %v1086_v39 = vadd.f32 %v1085_v35, %v1084_v13  ;;  %v1074_v45 = vadd.f32 %v1073_v38, %v1072_v33  ;;  %v2096_v33 = vld [vmem:[#allocation8 + $0x94] ss:$12 sps:$4 sm:$0xff]   ;;  %v2094_v13 = vld [vmem:[#allocation8 + $0x90] ss:$12 sps:$4 sm:$0xff]  }
 0x343   :  { %v1093_v41 = vadd.f32 %v1092_v36, %v1091_v34  ;;  %v1081_v47 = vadd.f32 %v1080_v40, %v1079_v18  ;;  %v2099_v18 = vld [vmem:[#allocation8 + $0xac] ss:$12 sps:$4 sm:$0xff]   ;;  %v2097_v34 = vld [vmem:[#allocation8 + $0xa8] ss:$12 sps:$4 sm:$0xff]   ;;  %v2102_v35 = vld [vmem:[#allocation8 + $0xc4] ss:$12 sps:$4 sm:$0xff]  }
 0x344   :  { %v1087_v42 = vrot.slane %v1086_v39, 1  ;;  %v2103_v36 = vld [vmem:[#allocation8 + $0xc8] ss:$12 sps:$4 sm:$0xff]   ;;  %v2100_v38 = vld [vmem:[#allocation8 + $0xc0] ss:$12 sps:$4 sm:$0xff]  }
 0x345   :  { %v1094_v43 = vrot.slane %v1093_v41, 1  ;;  %1920 = vmatprep.subr.bf16.mxu1 %v2103_v36  ;;  %v2107_v40 = vld [vmem:[#allocation8 + $0xdc] ss:$12 sps:$4 sm:$0xff]  }
 0x346   :  { %v1088_v46 = vadd.f32 %v1087_v42, %v1086_v39  ;;  %v2104_v39 = vld [vmem:[#allocation8 + $0x8] ss:$12 sps:$4 sm:$0xff]   ;;  %v2105_v42 = vld [vmem:[#allocation8 + $0xd8] ss:$12 sps:$4 sm:$0xff]  }
 0x347   :  { %v1095_v55 = vadd.f32 %v1094_v43, %v1093_v41  ;;  %v2108_v41 = vld [vmem:[#allocation8 + $0xe0] ss:$12 sps:$4 sm:$0xff]  }
 0x348   :  { %v1102_v57 = vsel %vm903_vm0, %v1088_v46, %v1074_v45  ;;  %v2109_v43 = vld [vmem:[#allocation8 + $0x20] ss:$12 sps:$4 sm:$0xff]   ;;  %v2113_v46 = vld [vmem:[#allocation8 + $0xf8] ss:$12 sps:$4 sm:$0xff]  }
 0x349   :  { %v1141_v48 = vadd.f32 %v1140_v6, %v1102_v57  ;;  %v1103_v50 = vsel %vm903_vm0, %v1095_v55, %v1081_v47  ;;  %v2112_v45 = vld [vmem:[#allocation8 + $0xf4] ss:$12 sps:$4 sm:$0xff]   ;;  %v2110_v47 = vld [vmem:[#allocation8 + $0xf0] ss:$12 sps:$4 sm:$0xff]   ;;  %v2114_v55 = vld [vmem:[#allocation8 + $0x38] ss:$12 sps:$4 sm:$0xff]  }
 0x34a   :  { %v1143_v51 = vadd.f32 %v1142_v11, %v1103_v50  ;;  %v2117_v57 = vld [vmem:[#allocation8 + $0x10c] ss:$12 sps:$4 sm:$0xff]   ;;  %v2115_v50 = vld [vmem:[#allocation8 + $0x108] ss:$12 sps:$4 sm:$0xff]  }
 0x34b   :  { %v1294_v52 = vpack.c.bf16 %v1141_v48, %v1141_v48 }
 0x34c   :  { %v1149_v53 = vcombine.low %v1141_v48, %v1143_v51  ;;  %v1295_v54 = vpack.c.bf16 %v1143_v51, %v1143_v51  ;;  %v2118_v48 = vld [vmem:[#allocation8 + $0x110] ss:$12 sps:$4 sm:$0xff]  }
 0x34d   :  { %v2119_v51 = vld [vmem:[#allocation8 + $0x50] ss:$12 sps:$4 sm:$0xff]  }
 0x34e   :  { %v1156_v58 = vrot.slane %v1149_v53, %v2568_v56  ;;  %1336 = vmatprep.mubr.bf16.mxu1 %v1295_v54  ;;  %v2123_v53 = vld [vmem:[#allocation8 + $0x128] ss:$12 sps:$4 sm:$0xff]   ;;  %v2120_v54 = vld [vmem:[#allocation8 + $0x120] ss:$12 sps:$4 sm:$0xff]  }
 0x34f   :  { %1337 = vmatmul.mubr.bf16.vlgmr.msra.gmra.mrb[16].mxu1 %v1294_v52  ;;  %v2122_v52 = vld [vmem:[#allocation8 + $0x124] ss:$12 sps:$4 sm:$0xff]  }
 0x350   :  { %v1157_v59 = vcombine.high %v1156_v58, %v1156_v58  ;;  %v1164_v5 = vrot.slane %v1156_v58, %v2568_v56  ;;  %1921 = vmatpush3.bf16.msra.mxu1 %v2104_v39  ;;  %v2124_v58 = vld [vmem:[#allocation8 + $0x68] ss:$12 sps:$4 sm:$0xff]  }
 0x351   :  { %1922 = vmatprep.subr.bf16.mxu1 %v2108_v41 }
 0x352   :  { %v1175_v7 = vrot.slane %v1164_v5, %v2563_v49  ;;  %v1179_v8 = vrot.slane %v1164_v5, %v2572_v37  ;;  %v1171_v9 = vrot.slane %v1157_v59, %v2568_v56  ;;  %v2127_v59 = vld [vmem:[#allocation8 + $0x13c] ss:$12 sps:$4 sm:$0xff]   ;;  %v2128_v5 = vld [vmem:[#allocation8 + $0x140] ss:$12 sps:$4 sm:$0xff]  }
 0x354   :  { %v1194_v6 = vmul.f32 %v1175_v7, %v2548_v27  ;;  %v1195_v10 = vmul.f32 %v1179_v8, %v2550_v28  ;;  %v1192_v11 = vmul.f32 %v1175_v7, %v2544_v25  ;;  %v1193_v12 = vmul.f32 %v1179_v8, %v2546_v26  ;;  %v2078_v26 = vld [vmem:[#allocation8 + $0x4] ss:$12 sps:$4 sm:$0xff]   ;;  %1923 = vmatpush3.bf16.msra.mxu1 %v2109_v43  ;;  %v2129_v8 = vld [vmem:[#allocation8 + $0x80] ss:$12 sps:$4 sm:$0xff]  }
 0x355   :  { %v1183_v14 = vrot.slane %v1171_v9, %v2563_v49  ;;  %v1187_v15 = vrot.slane %v1171_v9, %v2572_v37  ;;  %v2076_v49 = vld [vmem:[#allocation8] ss:$12 sps:$4 sm:$0xff]   ;;  %1667 = vmatprep.subr.bf16.mxu0 %v2078_v26  ;;  %v2081_v37 = vld [vmem:[#allocation8 + $0x1c] ss:$12 sps:$4 sm:$0xff]   ;;  %1924 = vmatprep.subr.bf16.mxu1 %v2113_v46  ;;  %v2125_v7 = vld [vmem:[#allocation8 + $0x138] ss:$12 sps:$4 sm:$0xff]  }
 0x356   :  { %v1203_v16 = vadd.f32 %v1195_v10, %v1194_v6  ;;  %v1200_v17 = vadd.f32 %v1193_v12, %v1192_v11  ;;  %1668 = vmatpush1.bf16.msra.mxu0 %v2076_v49  ;;  %v2132_v9 = vld [vmem:[#allocation8 + $0x154] ss:$12 sps:$4 sm:$0xff]   ;;  %v2133_v6 = vld [vmem:[#allocation8 + $0x158] ss:$12 sps:$4 sm:$0xff]   ;;  %v2130_v10 = vld [vmem:[#allocation8 + $0x150] ss:$12 sps:$4 sm:$0xff]  }
 0x357   :  { %v1198_v19 = vmul.f32 %v1183_v14, %v2556_v31  ;;  %v1199_v20 = vmul.f32 %v1187_v15, %v2558_v32  ;;  %v1196_v56 = vmul.f32 %v1183_v14, %v2552_v29  ;;  %v1197_v27 = vmul.f32 %v1187_v15, %v2554_v30  ;;  %1669 = vmatprep.subr.bf16.mxu0 %v2081_v37  ;;  %v2084_v31 = vld [vmem:[#allocation8 + $0x34] ss:$12 sps:$4 sm:$0xff]   ;;  %v2082_v32 = vld [vmem:[#allocation8 + $0x30] ss:$12 sps:$4 sm:$0xff]   ;;  %v2087_v29 = vld [vmem:[#allocation8 + $0x4c] ss:$12 sps:$4 sm:$0xff]  }
 0x358   :  { %1204 = vadd.xlane.f32.xlu1 %v1203_v16  ;;  %1201 = vadd.xlane.f32.xlu0 %v1200_v17  ;;  %v2085_v30 = vld [vmem:[#allocation8 + $0x48] ss:$12 sps:$4 sm:$0xff]   ;;  %v2134_v11 = vld [vmem:[#allocation8 + $0x98] ss:$12 sps:$4 sm:$0xff]   ;;  %v2138_v14 = vld [vmem:[#allocation8 + $0x170] ss:$12 sps:$4 sm:$0xff]  }
 0x359   :  { %v1209_v28 = vadd.f32 %v1199_v20, %v1198_v19  ;;  %v1206_v25 = vadd.f32 %v1197_v27, %v1196_v56  ;;  %1925 = vmatpush3.bf16.msra.mxu1 %v2114_v55  ;;  %v2137_v12 = vld [vmem:[#allocation8 + $0x16c] ss:$12 sps:$4 sm:$0xff]   ;;  %v2135_v15 = vld [vmem:[#allocation8 + $0x168] ss:$12 sps:$4 sm:$0xff]   ;;  %v2139_v16 = vld [vmem:[#allocation8 + $0xb0] ss:$12 sps:$4 sm:$0xff]  }
 0x35a   :  { %1670 = vmatpush1.bf16.msra.mxu0 %v2079_v21  ;;  %1926 = vmatprep.subr.bf16.mxu1 %v2118_v48 }
 0x35b   :  { %1671 = vmatprep.subr.bf16.mxu0 %v2084_v31 }
 0x35c   :  { %1210 = vadd.xlane.f32.xlu1 %v1209_v28  ;;  %1207 = vadd.xlane.f32.xlu0 %v1206_v25 }
 0x35d   :  { %1927 = vmatpush3.bf16.msra.mxu1 %v2119_v51 }
 0x35e   :  { %1672 = vmatpush1.bf16.msra.mxu0 %v2082_v32  ;;  %1928 = vmatprep.subr.bf16.mxu1 %v2123_v53 }
 0x35f   :  { %1673 = vmatprep.subr.bf16.mxu0 %v2087_v29 }
 0x361   :  { %1929 = vmatpush3.bf16.msra.mxu1 %v2124_v58 }
 0x362   :  { %1674 = vmatpush1.bf16.msra.mxu0 %v2085_v30  ;;  %1930 = vmatprep.subr.bf16.mxu1 %v2128_v5 }
 0x363   :  { %1675 = vmatprep.subr.bf16.mxu0 %v2090_v22 }
 0x365   :  { %1931 = vmatpush3.bf16.msra.mxu1 %v2129_v8 }
 0x366   :  { %1676 = vmatpush1.bf16.msra.mxu0 %v2088_v23  ;;  %1932 = vmatprep.subr.bf16.mxu1 %v2133_v6 }
 0x367   :  { %1677 = vmatprep.subr.bf16.mxu0 %v2093_v24 }
 0x369   :  { %1933 = vmatpush3.bf16.msra.mxu1 %v2134_v11 }
 0x36a   :  { %1678 = vmatpush1.bf16.msra.mxu0 %v2091_v60  ;;  %1934 = vmatprep.subr.bf16.mxu1 %v2138_v14 }
 0x36b   :  { %1679 = vmatprep.subr.bf16.mxu0 %v2096_v33 }
 0x36d   :  { %1935 = vmatpush3.bf16.msra.mxu1 %v2139_v16 }
 0x36e   :  { %1680 = vmatpush1.bf16.msra.mxu0 %v2094_v13 }
 0x36f   :  { %1681 = vmatprep.subr.bf16.mxu0 %v2099_v18 }
 0x372   :  { %1682 = vmatpush1.bf16.msra.mxu0 %v2097_v34 }
 0x373   :  { %1683 = vmatprep.subr.bf16.mxu0 %v2102_v35 }
 0x376   :  { %1684 = vmatpush1.bf16.msra.mxu0 %v2100_v38 }
 0x377   :  { %1685 = vmatprep.subr.bf16.mxu0 %v2107_v40 }
 0x37a   :  { %1686 = vmatpush1.bf16.msra.mxu0 %v2105_v42 }
 0x37b   :  { %1687 = vmatprep.subr.bf16.mxu0 %v2112_v45 }
 0x37e   :  { %1688 = vmatpush1.bf16.msra.mxu0 %v2110_v47 }
 0x37f   :  { %1689 = vmatprep.subr.bf16.mxu0 %v2117_v57 }
 0x382   :  { %1690 = vmatpush1.bf16.msra.mxu0 %v2115_v50 }
 0x383   :  { %1691 = vmatprep.subr.bf16.mxu0 %v2122_v52 }
 0x386   :  { %1692 = vmatpush1.bf16.msra.mxu0 %v2120_v54 }
 0x387   :  { %1693 = vmatprep.subr.bf16.mxu0 %v2127_v59 }
 0x38a   :  { %1694 = vmatpush1.bf16.msra.mxu0 %v2125_v7 }
 0x38b   :  { %1695 = vmatprep.subr.bf16.mxu0 %v2132_v9 }
 0x38e   :  { %1696 = vmatpush1.bf16.msra.mxu0 %v2130_v10 }
 0x38f   :  { %1697 = vmatprep.subr.bf16.mxu0 %v2137_v12 }
 0x392   :  { %1698 = vmatpush1.bf16.msra.mxu0 %v2135_v15 }
 0x3e5   :  { %v1205_v17 = vpop.xlane.xlu1 %1204  ;;  %v1202_v19 = vpop.xlane.xlu0 %1201 }
 0x3e6   :  { %v1212_v20 = vmax.f32 %v1202_v19, %v1205_v17 }
 0x3e8   :  { %v1213_v56 = vrot.slane %v1212_v20, 4 }
 0x3e9   :  { %v1211_v27 = vpop.xlane.xlu1 %1210  ;;  %v1208_v28 = vpop.xlane.xlu0 %1207 }
 0x3ea   :  { %v1214_v25 = vmax.f32 %v1212_v20, %v1213_v56  ;;  %v1219_v26 = vmax.f32 %v1208_v28, %v1211_v27 }
 0x3ec   :  { %v1215_v49 = vrot.slane %v1214_v25, 2  ;;  %v1220_v37 = vrot.slane %v1219_v26, 4 }
 0x3ee   :  { %v1216_v21 = vmax.f32 %v1214_v25, %v1215_v49  ;;  %v1221_v31 = vmax.f32 %v1219_v26, %v1220_v37 }
 0x3f0   :  { %v1217_v32 = vrot.slane %v1216_v21, 1  ;;  %v1222_v29 = vrot.slane %v1221_v31, 2 }
 0x3f2   :  { %v1218_v30 = vmax.f32 %v1216_v21, %v1217_v32  ;;  %v1223_v22 = vmax.f32 %v1221_v31, %v1222_v29 }
 0x3f4   :  { %v1226_v23 = vsub.f32 %v1202_v19, %v1218_v30  ;;  %v1227_v24 = vsub.f32 %v1205_v17, %v1218_v30  ;;  %v1224_v60 = vrot.slane %v1223_v22, 1 }
 0x3f6   :  { %v1230_v33 = vmul.f32 1.442695, %v1226_v23  ;;  %v1232_v13 = vmul.f32 1.442695, %v1227_v24  ;;  %v1225_v18 = vmax.f32 %v1223_v22, %v1224_v60 }
 0x3f8   :  { %2164 = vpow2.f32 %v1230_v33  ;;  %v1228_v34 = vsub.f32 %v1208_v28, %v1225_v18  ;;  %v1229_v35 = vsub.f32 %v1211_v27, %v1225_v18 }
 0x3f9   :  { %2166 = vpow2.f32 %v1232_v13 }
 0x3fa   :  { %v1234_v36 = vmul.f32 1.442695, %v1228_v34  ;;  %v1236_v38 = vmul.f32 1.442695, %v1229_v35 }
 0x3fc   :  { %2168 = vpow2.f32 %v1234_v36 }
 0x3fd   :  { %2170 = vpow2.f32 %v1236_v38 }
 0x402   :  { %v2165_v39 = vpop.eup %2164 }
 0x403   :  { %v2167_v40 = vpop.eup %2166 }
 0x404   :  { %v1238_v41 = vadd.f32 %v2167_v40, %v2165_v39 }
 0x406   :  { %v2169_v42 = vpop.eup %2168  ;;  %v1239_v43 = vrot.slane %v1238_v41, 4 }
 0x407   :  { %v2171_v45 = vpop.eup %2170 }
 0x408   :  { %v1240_v46 = vadd.f32 %v1239_v43, %v1238_v41  ;;  %v1245_v47 = vadd.f32 %v2171_v45, %v2169_v42 }
 0x40a   :  { %v1241_v55 = vrot.slane %v1240_v46, 2  ;;  %v1246_v57 = vrot.slane %v1245_v47, 4 }
 0x40c   :  { %v1242_v48 = vadd.f32 %v1241_v55, %v1240_v46  ;;  %v1247_v50 = vadd.f32 %v1246_v57, %v1245_v47  ;;  %v2306_v47 = vmov 1983009808  }
 0x40d   :  { %v1753_v55 = vunpack.c.l.s4 %v2306_v47 }
 0x40e   :  { %v1243_v51 = vrot.slane %v1242_v48, 1  ;;  %v1248_v52 = vrot.slane %v1247_v50, 2 }
 0x40f   :  { %v1754_v57 = vunpack.c.0.s8 %v1753_v55 }
 0x410   :  { %v1244_v53 = vadd.f32 %v1243_v51, %v1242_v48  ;;  %v1249_v54 = vadd.f32 %v1248_v52, %v1247_v50 }
 0x411   :  { %v1757_v51 = vsub.s32 %v1754_v57, %v2560_v44 }
 0x412   :  { %2172 = vrcp.f32 %v1244_v53  ;;  %v1250_v58 = vrot.slane %v1249_v54, 1 }
 0x414   :  { %v1251_v59 = vadd.f32 %v1250_v58, %v1249_v54 }
 0x416   :  { %2174 = vrcp.f32 %v1251_v59 }
 0x41c   :  { %v2173_v5 = vpop.eup %2172 }
 0x41d   :  { %v1253_v7 = vmul.f32 %v2173_v5, %v2165_v39  ;;  %v1254_v8 = vmul.f32 %v2173_v5, %v2167_v40 }
 0x41f   :  { %v1258_v9 = vmul.f32 %v1253_v7, %v2606_v61  ;;  %v1260_v6 = vmul.f32 %v1254_v8, %v2610_v63  ;;  %v1259_v10 = vmul.f32 %v1253_v7, %v2608_v62  ;;  %v1261_v11 = vmul.f32 %v1254_v8, %v2613_v1 }
 0x420   :  { %v2175_v12 = vpop.eup %2174 }
 0x421   :  { %v1256_v14 = vmul.f32 %v2175_v12, %v2169_v42  ;;  %v1257_v15 = vmul.f32 %v2175_v12, %v2171_v45  ;;  %v1266_v16 = vadd.f32 %v1260_v6, %v1258_v9  ;;  %v1273_v17 = vadd.f32 %v1261_v11, %v1259_v10 }
 0x422   :  { %v1338_v19 = vpop.f32.mrb[16].mxu1 }
 0x423   :  { %v1262_v20 = vmul.f32 %v1256_v14, %v2627_v2  ;;  %v1264_v56 = vmul.f32 %v1257_v15, %v2631_v0  ;;  %v1267_v27 = vrot.slane %v1266_v16, 4  ;;  %v1263_v28 = vmul.f32 %v1256_v14, %v2629_v3  ;;  %v1340_v61 = vpop.f32.mrb[17].mxu1 }
 0x424   :  { %v1265_v63 = vmul.f32 %v1257_v15, %v2633_v4  ;;  %v1274_v25 = vrot.slane %v1273_v17, 4  ;;  %v1342_v62 = vpop.f32.mrb[18].mxu1 }
 0x425   :  { %v1268_v26 = vadd.f32 %v1267_v27, %v1266_v16  ;;  %v1280_v1 = vadd.f32 %v1264_v56, %v1262_v20  ;;  %v1343_v49 = vpop.f32.mrb[19].mxu1 }
 0x426   :  { %v1275_v37 = vadd.f32 %v1274_v25, %v1273_v17  ;;  %v1287_v21 = vadd.f32 %v1265_v63, %v1263_v28 }
 0x427   :  { %v1269_v31 = vrot.slane %v1268_v26, 2  ;;  %v1281_v32 = vrot.slane %v1280_v1, 4 }
 0x428   :  { %v1276_v29 = vrot.slane %v1275_v37, 2  ;;  %v1288_v30 = vrot.slane %v1287_v21, 4 }
 0x429   :  { %v1270_v2 = vadd.f32 %v1269_v31, %v1268_v26  ;;  %v1282_v22 = vadd.f32 %v1281_v32, %v1280_v1 }
 0x42a   :  { %v1277_v0 = vadd.f32 %v1276_v29, %v1275_v37  ;;  %v1289_v23 = vadd.f32 %v1288_v30, %v1287_v21 }
 0x42b   :  { %v1283_v24 = vrot.slane %v1282_v22, 2  ;;  %v1271_v60 = vrot.slane %v1270_v2, 1 }
 0x42c   :  { %v1290_v3 = vrot.slane %v1289_v23, 2  ;;  %v1278_v4 = vrot.slane %v1277_v0, 1 }
 0x42d   :  { %v1284_v33 = vadd.f32 %v1283_v24, %v1282_v22  ;;  %v1272_v35 = vadd.f32 %v1271_v60, %v1270_v2 }
 0x42e   :  { %v1291_v13 = vadd.f32 %v1290_v3, %v1289_v23  ;;  %v1279_v38 = vadd.f32 %v1278_v4, %v1277_v0 }
 0x42f   :  { %v1285_v18 = vrot.slane %v1284_v33, 1 }
 0x430   :  { %v1292_v34 = vrot.slane %v1291_v13, 1 }
 0x431   :  { %v1286_v36 = vadd.f32 %v1285_v18, %v1284_v33 }
 0x432   :  { %v1293_v39 = vadd.f32 %v1292_v34, %v1291_v13 }
 0x433   :  { %v1300_v40 = vsel %vm903_vm0, %v1286_v36, %v1272_v35 }
 0x434   :  { %v1339_v41 = vadd.f32 %v1338_v19, %v1300_v40  ;;  %v1301_v42 = vsel %vm903_vm0, %v1293_v39, %v1279_v38 }
 0x435   :  { %v1341_v43 = vadd.f32 %v1340_v61, %v1301_v42 }
 0x436   :  { %v1345_v45 = vpack.c.bf16 %v1339_v41, %v1339_v41 }
 0x437   :  { %v1346_v46 = vpack.c.bf16 %v1341_v43, %v1341_v43 }
 0x439   :  { %1699 = vmatprep.mubr.bf16.mxu0 %v1346_v46  ;;  %1740 = vmatprep.mubr.bf16.mxu1 %v1346_v46 }
 0x43a   :  { %1700 = vmatmul.mubr.bf16.vlgmr.msra.gmra.mrb[28].mxu0 %v1345_v45  ;;  %1741 = vmatmul.mubr.bf16.vlgmr.msra.gmra.mrb[20].mxu1 %v1345_v45 }
 0x50d   :  { %v1701_v48 = vpop.f32.mrb[28].mxu0  ;;  %v1936_v50 = vpop.f32.mrb[20].mxu1 }
 0x50e   :  { %v1703_v52 = vpop.f32.mrb[29].mxu0  ;;  %v1937_v53 = vpop.f32.mrb[21].mxu1 }
 0x50f   :  { %v1751_v54 = vcombine.low %v1701_v48, %v1703_v52  ;;  %v1938_v58 = vadd.f32 %v1937_v53, %v1936_v50  ;;  %v1705_v59 = vpop.f32.mrb[30].mxu0  ;;  %v1939_v5 = vpop.f32.mrb[22].mxu1 }
 0x510   :  { %v1706_v7 = vpop.f32.mrb[31].mxu0  ;;  %v1940_v8 = vpop.f32.mrb[23].mxu1 }
 0x511   :  { %v1758_v9 = vrot.slane %v1751_v54, %v1757_v51  ;;  %v1765_v6 = vrot.slane %v1938_v58, %v1757_v51 }
 0x513   :  { %v1766_v10 = vcombine.low %v1758_v9, %v1765_v6 }
 0x515   :  { %1773 = vst.msk [vmem:[#allocation10] sm:$0x3f] %vm1772_vm5, %v1766_v10 }
 0x516   :  { %2275 = shalt.err (!%p2272_p8)
}
 0x517   :  { %s2276_s23 = scalar_lea.hbm %s2713_s5, 96 }
 0x518   :  { %p2277_p9 = scmp.ne.s32.totalorder %s2713_s5, %s2276_s23  ;;  %p2280_p10 = scmp.lt.u32.totalorder %s2276_s23, %s2713_s5 }
 0x51a   :  { %p2282_p11 = pnand %p2280_p10, %p2277_p9 }
 0x51c   :  { %2285 = shalt.err (!%p2282_p11)
}
 0x51d   :  { %1783 = dma.vmem_to_hbm [thread:$0]  %s1781_s19, 96, %s2713_s5, [#allocation4]  }
 0x51e   :  { %2292 = dma.done.wait [#allocation4], 96  }
 0x51f   :  { %2293 = vsyncadd [#allocation4], 4294967200 }
 0x520   :  { %1787 = vsyncpa [#allocation3], 1 }
 0x521   :  { %1788 = vsyncpa [#allocation6], 1 }
 0x522   :  { %1789 = vsyncpa [#allocation9], 1 }
 0x523   :  { %1790 = vsyncpa [#allocation4], 1 }

</bundles_post_ra>
